<compile_context>
chip_gen: v5e
topology: v5e:2x2
jax: 0.10.0
libtpu: 0.0.40
codegen_flags: <defaults>
</compile_context>

<pallas_src>
import math
import functools

import jax
import jax.numpy as jnp
from jax import lax
from jax.experimental import pallas as pl
from jax.experimental.pallas import tpu as pltpu


# ----------------------------------------------------------------------------
# Kernel helpers
# ----------------------------------------------------------------------------
def _softmax_lastdim(s):
    s = s - jnp.max(s, axis=-1, keepdims=True)
    e = jnp.exp(s)
    # Exact normalization (review correctness note): a handful of f32 divides is
    # negligible here and rows sum to 1 exactly.
    return e / jnp.sum(e, axis=-1, keepdims=True)


# ----------------------------------------------------------------------------
# Kernel (single gridless step; static loop over batch)
# ----------------------------------------------------------------------------
def _mh_kernel(x_ref, w_ref, b_ref, o_ref, *, en_mult_g, d_k, B, T, V, D):
    scale = 1.0 / math.sqrt(d_k)
    if not en_mult_g:
        scale = scale / 12.0          # fixed constant from the reference module

    for b in range(B):                # static unroll, B == 2
        x_b = x_ref[b]                # (D, T*V): lane-dense native-layout load
        # Fused Q|K projection: (2D, D) @ (D, T*V) -> (2D, T*V), one MXU matmul,
        # lane-dense output.  Bias broadcasts over lanes.
        qk = jnp.dot(w_ref[...], x_b, preferred_element_type=jnp.float32)
        qk = qk + b_ref[...]          # (2D, 1)
        # One cheap in-register XLU transpose; downstream is the proven
        # (rows, features) orientation of the previous revision.
        qk_t = qk.T                   # (T*V, 2D)
        q = qk_t[:, :D].reshape(T, V, D)
        k = qk_t[:, D:].reshape(T, V, D)
        # Summing per-head Q K^T over heads == full-width Q K^T (the head split
        # just partitions d_model), so contract all of D at once, batched over T.
        s = lax.dot_general(q, k, (((2,), (2,)), ((0,), (0,))),
                            preferred_element_type=jnp.float32)   # (T, V, V)
        if en_mult_g:
            o_ref[b] = _softmax_lastdim(s * scale).astype(o_ref.dtype)
        else:
            # en_mult_g=False additionally sums over T before the softmax.
            o_ref[b] = _softmax_lastdim(jnp.sum(s, axis=0) * scale).astype(o_ref.dtype)


# ----------------------------------------------------------------------------
# One-time parameter fusion (outside the per-call forward path)
# ----------------------------------------------------------------------------
def fuse_multihead_params(wq, bq, wk, bk):
    """Fuse Q|K Linear params once at init: returns (w_qk_t [2D,D], b_qk [2D,1])."""
    w_qk_t = jnp.concatenate([wq, wk], axis=1).T      # (2D, D)
    b_qk = jnp.concatenate([bq, bk], axis=1).T        # (2D, 1)
    return w_qk_t, b_qk


# ----------------------------------------------------------------------------
# Wrapper
# ----------------------------------------------------------------------------
def multihead_pallas(x, fused_params, *, en_mult_g, h):
    """x: [B, d_model, T, V] (native NCHW, as in torch).  Returns p_attn."""
    B, d_model, T, V = x.shape
    assert d_model % h == 0
    d_k = d_model // h
    w_qk_t, b_qk = fused_params                        # (2D, D), (2D, 1)

    # Free, contiguous metadata reshape (NOT a transpose / HBM round-trip).
    x3 = x.reshape(B, d_model, T * V)

    out_dims = (B, T, V, V) if en_mult_g else (B, V, V)
    out_elems = 1
    for d in out_dims:
        out_elems *= d

    flops = B * (2 * (2 * d_model) * d_model * (T * V)      # fused projection
                 + 2 * T * V * V * d_model)                  # per-t scores
    transcendentals = (B * T * V * V) if en_mult_g else (B * V * V)
    bytes_accessed = 4 * (x3.size + w_qk_t.size + b_qk.size + out_elems)

    kernel = functools.partial(_mh_kernel, en_mult_g=en_mult_g, d_k=d_k,
                               B=B, T=T, V=V, D=d_model)
    vmem = pltpu.MemorySpace.VMEM
    return pl.pallas_call(
        kernel,
        out_shape=jax.ShapeDtypeStruct(out_dims, x.dtype),
        in_specs=[pl.BlockSpec(memory_space=vmem)] * 3,     # whole arrays in VMEM
        out_specs=pl.BlockSpec(memory_space=vmem),
        cost_estimate=pl.CostEstimate(flops=flops,
                                      transcendentals=transcendentals,
                                      bytes_accessed=bytes_accessed),
    )(x3, w_qk_t, b_qk)


# ----------------------------------------------------------------------------
# Pure-JAX reference (mirrors the torch forward exactly, mask=None, eval mode)
# ----------------------------------------------------------------------------
def multihead_ref(x, params, *, en_mult_g, h):
    B, d_model, T, V = x.shape
    d_k = d_model // h
    wq, bq, wk, bk = params
    xp = jnp.transpose(x, (0, 2, 3, 1))                        # [B, T, V, D]
    q = xp @ wq + bq[0]
    k = xp @ wk + bk[0]
    q = q.reshape(B, T, V, h, d_k).transpose(0, 1, 3, 2, 4)    # [B, T, h, V, d_k]
    k = k.reshape(B, T, V, h, d_k).transpose(0, 1, 3, 2, 4)
    scores = jnp.einsum("bthmd,bthnd->bthmn", q, k)            # [B, T, h, V, V]
    if en_mult_g:
        s = scores.sum(axis=2) / math.sqrt(d_k)                # ijkmn->ijmn
    else:
        s = scores.sum(axis=(1, 2)) / math.sqrt(d_k) / 12.0    # ijkmn->imn
    return jax.nn.softmax(s, axis=-1)


# ----------------------------------------------------------------------------
# Main
# ----------------------------------------------------------------------------
if __name__ == "__main__":
    B, d_model, T, V, h = 2, 32, 8, 16, 4

    key = jax.random.PRNGKey(0)
    kx, kwq, kbq, kwk, kbk = jax.random.split(key, 5)

    x = jax.random.normal(kx, (B, d_model, T, V), dtype=jnp.float32)

    # Deterministic nn.Linear-style init, stored as [D_in, D_out] (x @ W layout).
    bound_w = 1.0 / math.sqrt(d_model)
    wq = jax.random.uniform(kwq, (d_model, d_model), jnp.float32, -bound_w, bound_w)
    wk = jax.random.uniform(kwk, (d_model, d_model), jnp.float32, -bound_w, bound_w)
    bq = jax.random.uniform(kbq, (1, d_model), jnp.float32, -bound_w, bound_w)
    bk = jax.random.uniform(kbk, (1, d_model), jnp.float32, -bound_w, bound_w)
    params = (wq, bq, wk, bk)

    # One-time fusion (init-time, not per-forward).
    fused = fuse_multihead_params(wq, bq, wk, bk)

    ok = True
    for en_mult_g in (True, False):
        out = multihead_pallas(x, fused, en_mult_g=en_mult_g, h=h)
        out = jax.block_until_ready(out)
        ref = multihead_ref(x, params, en_mult_g=en_mult_g, h=h)
        # 1e-3 covers the MXU f32 pass vs. XLA default-precision reference matmul
        # difference; the softmax normalization itself is exact now.
        if not jnp.allclose(out, ref, atol=1e-3, rtol=1e-3):
            ok = False
            print(f"MISMATCH en_mult_g={en_mult_g}: "
                  f"max abs err {jnp.max(jnp.abs(out - ref))}")

    if ok:
        print("KERNEL_OK")
</pallas_src>

<mosaic_0001>
module attributes {stable_mosaic.version = 11 : i64} {
  func.func @_mh_kernel(%arg0: memref<2x32x128xf32, #tpu.memory_space<vmem>>, %arg1: memref<64x32xf32, #tpu.memory_space<vmem>>, %arg2: memref<64x1xf32, #tpu.memory_space<vmem>>, %arg3: memref<2x8x16x16xf32, #tpu.memory_space<vmem>>) attributes {dimension_semantics = [], scalar_prefetch = 0 : i64, scratch_operands = 0 : i64, tpu.core_type = #tpu.core_type<tc>} {
    %c0 = arith.constant 0 : index
    %c0_0 = arith.constant 0 : index
    %c0_1 = arith.constant 0 : index
    %0 = vector.load %arg0[%c0, %c0_0, %c0_1] : memref<2x32x128xf32, #tpu.memory_space<vmem>>, vector<1x32x128xf32>
    %1 = vector.shape_cast %0 : vector<1x32x128xf32> to vector<32x128xf32>
    %c0_2 = arith.constant 0 : index
    %c0_3 = arith.constant 0 : index
    %2 = vector.load %arg1[%c0_2, %c0_3] : memref<64x32xf32, #tpu.memory_space<vmem>>, vector<64x32xf32>
    %cst = arith.constant dense<0.000000e+00> : vector<64x128xf32>
    %3 = tpu.matmul %2, %1, %cst {dimension_numbers = #tpu.dot_dimension_numbers<[1], [0], [0], [1], [0, 0, 1, 1], [], []>} : vector<64x32xf32>, vector<32x128xf32>, vector<64x128xf32> -> vector<64x128xf32>
    %c0_4 = arith.constant 0 : index
    %c0_5 = arith.constant 0 : index
    %4 = vector.load %arg2[%c0_4, %c0_5] : memref<64x1xf32, #tpu.memory_space<vmem>>, vector<64x1xf32>
    %5 = vector.broadcast %4 : vector<64x1xf32> to vector<64x128xf32>
    %6 = arith.addf %3, %5 : vector<64x128xf32>
    %7 = tpu.transpose %6, [1, 0] : vector<64x128xf32> -> vector<128x64xf32>
    %8 = vector.extract_strided_slice %7 {offsets = [0, 0], sizes = [128, 32], strides = [1, 1]} : vector<128x64xf32> to vector<128x32xf32>
    %9 = vector.shape_cast %8 : vector<128x32xf32> to vector<8x16x32xf32>
    %10 = vector.extract_strided_slice %7 {offsets = [0, 32], sizes = [128, 32], strides = [1, 1]} : vector<128x64xf32> to vector<128x32xf32>
    %11 = vector.shape_cast %10 : vector<128x32xf32> to vector<8x16x32xf32>
    %cst_6 = arith.constant dense<0.000000e+00> : vector<8x16x16xf32>
    %12 = tpu.matmul %9, %11, %cst_6 {dimension_numbers = #tpu.dot_dimension_numbers<[2], [2], [1], [1], [0, 0, 0, 1, 1, 1], [0], [0]>} : vector<8x16x32xf32>, vector<8x16x32xf32>, vector<8x16x16xf32> -> vector<8x16x16xf32>
    %cst_7 = arith.constant 0.353553385 : f32
    %13 = vector.broadcast %cst_7 : f32 to vector<8x16x16xf32>
    %14 = arith.mulf %12, %13 : vector<8x16x16xf32>
    %cst_8 = arith.constant dense<0xFF800000> : vector<8x16xf32>
    %15 = vector.multi_reduction <maximumf>, %14, %cst_8 [2] : vector<8x16x16xf32> to vector<8x16xf32>
    %16 = vector.shape_cast %15 : vector<8x16xf32> to vector<8x16x1xf32>
    %17 = vector.broadcast %16 : vector<8x16x1xf32> to vector<8x16x16xf32>
    %18 = arith.subf %14, %17 : vector<8x16x16xf32>
    %19 = math.exp %18 : vector<8x16x16xf32>
    %cst_9 = arith.constant dense<0.000000e+00> : vector<8x16xf32>
    %20 = vector.multi_reduction <add>, %19, %cst_9 [2] : vector<8x16x16xf32> to vector<8x16xf32>
    %21 = vector.shape_cast %20 : vector<8x16xf32> to vector<8x16x1xf32>
    %22 = vector.broadcast %21 : vector<8x16x1xf32> to vector<8x16x16xf32>
    %23 = arith.divf %19, %22 : vector<8x16x16xf32>
    %c0_10 = arith.constant 0 : index
    %c0_11 = arith.constant 0 : index
    %c0_12 = arith.constant 0 : index
    %c0_13 = arith.constant 0 : index
    %24 = vector.load %arg3[%c0_10, %c0_11, %c0_12, %c0_13] : memref<2x8x16x16xf32, #tpu.memory_space<vmem>>, vector<1x8x16x16xf32>
    %25 = vector.shape_cast %24 : vector<1x8x16x16xf32> to vector<8x16x16xf32>
    %26 = vector.shape_cast %23 : vector<8x16x16xf32> to vector<1x8x16x16xf32>
    tpu.vector_store %arg3[%c0_10, %c0_11, %c0_12, %c0_13], %26 {strides = array<i32>} : memref<2x8x16x16xf32, #tpu.memory_space<vmem>>, vector<1x8x16x16xf32>,
    %c1 = arith.constant 1 : index
    %c0_14 = arith.constant 0 : index
    %c0_15 = arith.constant 0 : index
    %27 = vector.load %arg0[%c1, %c0_14, %c0_15] : memref<2x32x128xf32, #tpu.memory_space<vmem>>, vector<1x32x128xf32>
    %28 = vector.shape_cast %27 : vector<1x32x128xf32> to vector<32x128xf32>
    %c0_16 = arith.constant 0 : index
    %c0_17 = arith.constant 0 : index
    %29 = vector.load %arg1[%c0_16, %c0_17] : memref<64x32xf32, #tpu.memory_space<vmem>>, vector<64x32xf32>
    %cst_18 = arith.constant dense<0.000000e+00> : vector<64x128xf32>
    %30 = tpu.matmul %29, %28, %cst_18 {dimension_numbers = #tpu.dot_dimension_numbers<[1], [0], [0], [1], [0, 0, 1, 1], [], []>} : vector<64x32xf32>, vector<32x128xf32>, vector<64x128xf32> -> vector<64x128xf32>
    %c0_19 = arith.constant 0 : index
    %c0_20 = arith.constant 0 : index
    %31 = vector.load %arg2[%c0_19, %c0_20] : memref<64x1xf32, #tpu.memory_space<vmem>>, vector<64x1xf32>
    %32 = vector.broadcast %31 : vector<64x1xf32> to vector<64x128xf32>
    %33 = arith.addf %30, %32 : vector<64x128xf32>
    %34 = tpu.transpose %33, [1, 0] : vector<64x128xf32> -> vector<128x64xf32>
    %35 = vector.extract_strided_slice %34 {offsets = [0, 0], sizes = [128, 32], strides = [1, 1]} : vector<128x64xf32> to vector<128x32xf32>
    %36 = vector.shape_cast %35 : vector<128x32xf32> to vector<8x16x32xf32>
    %37 = vector.extract_strided_slice %34 {offsets = [0, 32], sizes = [128, 32], strides = [1, 1]} : vector<128x64xf32> to vector<128x32xf32>
    %38 = vector.shape_cast %37 : vector<128x32xf32> to vector<8x16x32xf32>
    %cst_21 = arith.constant dense<0.000000e+00> : vector<8x16x16xf32>
    %39 = tpu.matmul %36, %38, %cst_21 {dimension_numbers = #tpu.dot_dimension_numbers<[2], [2], [1], [1], [0, 0, 0, 1, 1, 1], [0], [0]>} : vector<8x16x32xf32>, vector<8x16x32xf32>, vector<8x16x16xf32> -> vector<8x16x16xf32>
    %cst_22 = arith.constant 0.353553385 : f32
    %40 = vector.broadcast %cst_22 : f32 to vector<8x16x16xf32>
    %41 = arith.mulf %39, %40 : vector<8x16x16xf32>
    %cst_23 = arith.constant dense<0xFF800000> : vector<8x16xf32>
    %42 = vector.multi_reduction <maximumf>, %41, %cst_23 [2] : vector<8x16x16xf32> to vector<8x16xf32>
    %43 = vector.shape_cast %42 : vector<8x16xf32> to vector<8x16x1xf32>
    %44 = vector.broadcast %43 : vector<8x16x1xf32> to vector<8x16x16xf32>
    %45 = arith.subf %41, %44 : vector<8x16x16xf32>
    %46 = math.exp %45 : vector<8x16x16xf32>
    %cst_24 = arith.constant dense<0.000000e+00> : vector<8x16xf32>
    %47 = vector.multi_reduction <add>, %46, %cst_24 [2] : vector<8x16x16xf32> to vector<8x16xf32>
    %48 = vector.shape_cast %47 : vector<8x16xf32> to vector<8x16x1xf32>
    %49 = vector.broadcast %48 : vector<8x16x1xf32> to vector<8x16x16xf32>
    %50 = arith.divf %46, %49 : vector<8x16x16xf32>
    %c1_25 = arith.constant 1 : index
    %c0_26 = arith.constant 0 : index
    %c0_27 = arith.constant 0 : index
    %c0_28 = arith.constant 0 : index
    %51 = vector.load %arg3[%c1_25, %c0_26, %c0_27, %c0_28] : memref<2x8x16x16xf32, #tpu.memory_space<vmem>>, vector<1x8x16x16xf32>
    %52 = vector.shape_cast %51 : vector<1x8x16x16xf32> to vector<8x16x16xf32>
    %53 = vector.shape_cast %50 : vector<8x16x16xf32> to vector<1x8x16x16xf32>
    tpu.vector_store %arg3[%c1_25, %c0_26, %c0_27, %c0_28], %53 {strides = array<i32>} : memref<2x8x16x16xf32, #tpu.memory_space<vmem>>, vector<1x8x16x16xf32>,
    return
  }
}

</mosaic_0001>

<bundles_post_ra>
// kernel: tpu_custom_call.1
= control target key start
LH: loop header
LB: loop body
LE: loop exit
PB: predicated region body
PF: predicated region fallthrough
CT: control target
= control target key end

     0   :  { %v2022_v3 = vmov 0   ;;  %vm75_vm0 = vcmask 261120   ;;  %s2900_s0 = inlined_call_operand.vmem [shape: f32[2,32,128], index: 0, kind: input, shape index: {}]   ;;  %s2901_s1 = inlined_call_operand.vmem [shape: f32[64,32], index: 1, kind: input, shape index: {}]   ;;  %s2902_s2 = inlined_call_operand.vmem [shape: f32[64,1], index: 2, kind: input, shape index: {}]   ;;  %s2903_s3 = inlined_call_operand.hbm [shape: f32[2,8,16,16], index: 3, kind: output, shape index: {}]  }
   0x1   :  { %v18_v0 = vld [vmem:[%s2900_s0 + $0x18] sm:$0xff]  ;;  %v2053_v1 = vld [vmem:[%s2902_s2] sm:$0xff]  ;;  %v17_v2 = vld [vmem:[%s2900_s0 + $0x10] sm:$0xff]  ;;  %1865 = vset.pattern.permute.xlu0 %v2022_v3  ;;  %1866 = vset.pattern.permute.xlu1 %v2022_v3 }
   0x2   :  { %112 = vmatpush.msra.mxu0 %v18_v0  ;;  %37 = vperm.xlu0 %1865, %v2053_v1   ;;  %v16_v4 = vld [vmem:[%s2900_s0 + $0x8] sm:$0xff]  ;;  %v2065_v5 = vld [vmem:[%s2902_s2 + $0x10] sm:$0xff]  ;;  %v15_v6 = vld [vmem:[%s2900_s0] sm:$0xff] }
   0x3   :  { %47 = vperm.xlu1 %1866, %v2065_v5   ;;  %1867 = vset.pattern.permute.xlu2 %v2022_v3  ;;  %v2074_v7 = vld [vmem:[%s2901_s1] sm:$0xff] }
   0x4   :  { %113 = vmatpush.msra.mxu0 %v17_v2 }
   0x6   :  { %114 = vmatpush.msra.mxu0 %v16_v4 }
   0x7   :  { %8 = vsyncpa [#allocation3], 0  ;;  %v2079_v8 = vld [vmem:[%s2902_s2 + $0x8] sm:$0xff]  ;;  %v2086_v9 = vld [vmem:[%s2902_s2 + $0x18] sm:$0xff]  ;;  %vm485_vm1 = vcmask 130048   ;;  %s1763_s8 = sshll.u32 %s2903_s3, 4  ;;  %s1764_s8 = int_to_ptr.hbm [resolvable:$true] %s1763_s8 }
   0x8   :  { %115 = vmatpush.msra.mxu0 %v15_v6  ;;  %v2093_v10 = vld [vmem:[%s2901_s1 + $0x8] sm:$0xff]  ;;  %v2098_v11 = vld [vmem:[%s2902_s2 + $0x30] sm:$0xff]  ;;  %v2105_v12 = vld [vmem:[%s2902_s2 + $0x38] sm:$0xff]  ;;  %s2025_s9 = smov 128   ;;  %s2026_s10 = smov 8  }
   0x9   :  { %1775 = vmatmul.msk.f32.vlgmr.msra.gmra.mxu0 %vm75_vm0, %v2074_v7  ;;  %v2112_v13 = vld [vmem:[%s2901_s1 + $0x10] sm:$0xff]  ;;  %v2119_v14 = vld [vmem:[%s2901_s1 + $0x18] sm:$0xff]  ;;  %v2126_v15 = vld [vmem:[%s2902_s2 + $0x20] sm:$0xff] }
   0xa   :  { %42 = vperm.xlu0 %1865, %v2079_v8   ;;  %57 = vperm.xlu2 %1867, %v2126_v15   ;;  %v2132_v16 = vld [vmem:[%s2901_s1 + $0x20] sm:$0xff]  ;;  %v2137_v17 = vld [vmem:[%s2902_s2 + $0x28] sm:$0xff]  ;;  %v2152_v19 = vld [vmem:[%s2901_s1 + $0x30] sm:$0xff] }
   0xb   :  { %52 = vperm.xlu1 %1866, %v2086_v9   ;;  %v2145_v18 = vld [vmem:[%s2901_s1 + $0x28] sm:$0xff]  ;;  %v2159_v20 = vld [vmem:[%s2901_s1 + $0x38] sm:$0xff]  ;;  %s2023_s1 = smov 96   ;;  %v1817_v6 = vld [vmem:[%s2900_s0 + $0x30] sm:$0xff] }
  0x11   :  { %1776 = vmatmul.msk.f32.gmra.mxu0 %vm75_vm0, %v2093_v10 }
  0x12   :  { %67 = vperm.xlu0 %1865, %v2098_v11   ;;  %62 = vperm.xlu2 %1867, %v2137_v17  }
  0x13   :  { %72 = vperm.xlu1 %1866, %v2105_v12  }
  0x19   :  { %1777 = vmatmul.msk.f32.gmra.mxu0 %vm75_vm0, %v2112_v13 }
  0x21   :  { %1778 = vmatmul.msk.f32.gmra.mxu0 %vm75_vm0, %v2119_v14 }
  0x29   :  { %1779 = vmatmul.msk.f32.gmra.mxu0 %vm75_vm0, %v2132_v16 }
  0x31   :  { %1780 = vmatmul.msk.f32.gmra.mxu0 %vm75_vm0, %v2145_v18 }
  0x39   :  { %1781 = vmatmul.msk.f32.gmra.mxu0 %vm75_vm0, %v2152_v19 }
  0x41   :  { %1782 = vmatmul.msk.f32.gmra.mxu0 %vm75_vm0, %v2159_v20 }
  0x64   :  { %v58_v33 = vpop.permute.xlu2 %57 }
  0x6c   :  { %v63_v36 = vpop.permute.xlu2 %62 }
  0x74   :  { %v38_v21 = vpop.permute.xlu0 %37 }
  0x75   :  { %v48_v27 = vpop.permute.xlu1 %47 }
  0x7c   :  { %v43_v24 = vpop.permute.xlu0 %42 }
  0x7d   :  { %v53_v30 = vpop.permute.xlu1 %52 }
  0x84   :  { %v68_v39 = vpop.permute.xlu0 %67 }
  0x85   :  { %v73_v42 = vpop.permute.xlu1 %72 }
  0x86   :  { %v117_v22 = vpop.f32.mrf.mxu0 }
  0x87   :  { %v118_v23 = vadd.f32 %v117_v22, %v38_v21 }
  0x89   :  { %141 = vxpose.xlu2.b32.start [1/8] (short) %v118_v23, 128 }
  0x8e   :  { %v120_v25 = vpop.f32.mrf.mxu0 }
  0x8f   :  { %v121_v26 = vadd.f32 %v120_v25, %v43_v24 }
  0x91   :  { %142 = vxpose.xlu2.b32.cont [2/8] (short) %v121_v26, 128 }
  0x96   :  { %v123_v28 = vpop.f32.mrf.mxu0 }
  0x97   :  { %v124_v29 = vadd.f32 %v123_v28, %v48_v27 }
  0x99   :  { %143 = vxpose.xlu2.b32.cont [3/8] (short) %v124_v29, 128 }
  0x9e   :  { %v126_v31 = vpop.f32.mrf.mxu0 }
  0x9f   :  { %v127_v32 = vadd.f32 %v126_v31, %v53_v30 }
  0xa1   :  { %144 = vxpose.xlu2.b32.cont [4/8] (short) %v127_v32, 128 }
  0xa6   :  { %v129_v34 = vpop.f32.mrf.mxu0 }
  0xa7   :  { %v130_v35 = vadd.f32 %v129_v34, %v58_v33 }
  0xa9   :  { %145 = vxpose.xlu2.b32.cont [5/8] (short) %v130_v35, 128 }
  0xae   :  { %v132_v37 = vpop.f32.mrf.mxu0 }
  0xaf   :  { %v133_v38 = vadd.f32 %v132_v37, %v63_v36 }
  0xb1   :  { %146 = vxpose.xlu2.b32.cont [6/8] (short) %v133_v38, 128 }
  0xb6   :  { %v135_v40 = vpop.f32.mrf.mxu0 }
  0xb7   :  { %v136_v41 = vadd.f32 %v135_v40, %v68_v39 }
  0xb9   :  { %147 = vxpose.xlu2.b32.cont [7/8] (short) %v136_v41, 128 }
  0xbe   :  { %v138_v43 = vpop.f32.mrf.mxu0 }
  0xbf   :  { %v139_v44 = vadd.f32 %v138_v43, %v73_v42 }
  0xc1   :  { %148 = vxpose.xlu2.b32.end [8/8] (short) %v139_v44, 128 }
 0x122   :  { %v157_v45 = vpop.trf.xlu2 }
 0x12a   :  { %v2163_v46 = vpop.trf.xlu2 }
 0x132   :  { %v2165_v47 = vpop.trf.xlu2 }
 0x13a   :  { %v2167_v48 = vpop.trf.xlu2 }
 0x142   :  { %v161_v49 = vpop.trf.xlu2 }
 0x143   :  { %249 = vrot.lane.b32.xlu1 %v161_v49, %s2023_s1 }
 0x14a   :  { %v162_v50 = vpop.trf.xlu2 }
 0x14b   :  { %251 = vrot.lane.b32.xlu0 %v162_v50, %s2023_s1 }
 0x152   :  { %v2171_v51 = vpop.trf.xlu2 }
 0x153   :  { %175 = vrot.lane.b32.xlu0 %v157_v45, %s2023_s1 }
 0x15a   :  { %v2174_v52 = vpop.trf.xlu2 }
 0x15b   :  { %212 = vrot.lane.b32.xlu0 %v2165_v47, %s2023_s1 }
 0x162   :  { %v2178_v53 = vpop.trf.xlu2 }
 0x163   :  { %286 = vrot.lane.b32.xlu0 %v2171_v51, %s2023_s1 }
 0x16a   :  { %v2182_v54 = vpop.trf.xlu2 }
 0x172   :  { %v167_v55 = vpop.trf.xlu2 }
 0x173   :  { %360 = vrot.lane.b32.xlu1 %v167_v55, %s2023_s1 }
 0x17a   :  { %v168_v56 = vpop.trf.xlu2 }
 0x17b   :  { %177 = vrot.lane.b32.xlu1 %v2163_v46, %s2023_s1  ;;  %362 = vrot.lane.b32.xlu0 %v168_v56, %s2023_s1 }
 0x182   :  { %v2202_v57 = vpop.trf.xlu2 }
 0x183   :  { %214 = vrot.lane.b32.xlu1 %v2167_v48, %s2023_s1  ;;  %909 = vperm.xlu0 %1865, %v2053_v1  }
 0x18a   :  { %v2208_v58 = vpop.trf.xlu2 }
 0x18b   :  { %288 = vrot.lane.b32.xlu1 %v2174_v52, %s2023_s1  ;;  %919 = vperm.xlu0 %1865, %v2065_v5   ;;  %v1818_v5 = vld [vmem:[%s2900_s0 + $0x38] sm:$0xff] }
 0x192   :  { %v2212_v60 = vpop.trf.xlu2 }
 0x193   :  { %914 = vperm.xlu1 %1866, %v2079_v8   ;;  %929 = vperm.xlu0 %1865, %v2126_v15  }
 0x194   :  { %434 = vrot.lane.b32.xlu2 %v2212_v60, %s2023_s1 }
 0x19a   :  { %v2219_v62 = vpop.trf.xlu2 }
 0x19b   :  { %924 = vperm.xlu1 %1866, %v2086_v9   ;;  %939 = vperm.xlu0 %1865, %v2098_v11   ;;  %v1816_v9 = vld [vmem:[%s2900_s0 + $0x28] sm:$0xff]  ;;  %v1815_v11 = vld [vmem:[%s2900_s0 + $0x20] sm:$0xff]  ;;  %s2024_s0 = smov [#allocation2]  }
 0x19c   :  { %s1761_s5 = sshll.u32 %s2024_s0, 4  ;;  %s1762_s5 = int_to_ptr.vmem [resolvable:$true] %s1761_s5 }
 0x1a3   :  { %934 = vperm.xlu1 %1866, %v2137_v17   ;;  %323 = vrot.lane.b32.xlu0 %v2178_v53, %s2023_s1 }
 0x1ab   :  { %944 = vperm.xlu1 %1866, %v2105_v12   ;;  %397 = vrot.lane.b32.xlu0 %v2202_v57, %s2023_s1 }
 0x1b3   :  { %325 = vrot.lane.b32.xlu1 %v2182_v54, %s2023_s1 }
 0x1b5   :  { %v250_v61 = vpop.permute.xlu1 %249 }
 0x1bb   :  { %399 = vrot.lane.b32.xlu1 %v2208_v58, %s2023_s1 }
 0x1bd   :  { %v252_v59 = vpop.permute.xlu0 %251 }
 0x1be   :  { %1791 = vmatpush.xpose.msk.msra.mxu3 %vm75_vm0, %v252_v59 }
 0x1c2   :  { %1792 = vmatpush.xpose.msk.msra.mxu3 %vm75_vm0, %v250_v61 }
 0x1c3   :  { %436 = vrot.lane.b32.xlu1 %v2219_v62, %s2023_s1 }
 0x1c5   :  { %1793 = vmatmul.msk.f32.vlgmr.msra.gmra.mxu3 %vm75_vm0, %v161_v49  ;;  %v176_v63 = vpop.permute.xlu0 %175 }
 0x1cd   :  { %1794 = vmatmul.msk.f32.gmra.mxu3 %vm75_vm0, %v162_v50  ;;  %v213_v0 = vpop.permute.xlu0 %212 }
 0x1d5   :  { %v287_v1 = vpop.permute.xlu0 %286 }
 0x1e5   :  { %v361_v2 = vpop.permute.xlu1 %360 }
 0x1ed   :  { %v178_v3 = vpop.permute.xlu1 %177  ;;  %v363_v4 = vpop.permute.xlu0 %362 }
 0x1ee   :  { %1783 = vmatpush.xpose.msk.msra.mxu1 %vm75_vm0, %v178_v3  ;;  %1803 = vmatpush.xpose.msk.msrb.mxu3 %vm75_vm0, %v363_v4 }
 0x1f2   :  { %1784 = vmatpush.xpose.msk.msra.mxu1 %vm75_vm0, %v176_v63  ;;  %1804 = vmatpush.xpose.msk.msrb.mxu3 %vm75_vm0, %v361_v2 }
 0x1f5   :  { %1785 = vmatmul.msk.f32.vlgmr.msra.gmra.mxu1 %vm75_vm0, %v157_v45  ;;  %v215_v8 = vpop.permute.xlu1 %214  ;;  %1805 = vmatmul.msk.f32.vlgmr.msrb.gmra.mxu3 %vm75_vm0, %v167_v55  ;;  %v910_v15 = vpop.permute.xlu0 %909 }
 0x1f6   :  { %983 = vmatpush.msra.mxu3 %v1818_v5  ;;  %1787 = vmatpush.xpose.msk.msra.mxu2 %vm75_vm0, %v215_v8 }
 0x1f8   :  { %984 = vmatpush.msra.mxu3 %v1817_v6 }
 0x1fa   :  { %985 = vmatpush.msra.mxu3 %v1816_v9  ;;  %1788 = vmatpush.xpose.msk.msra.mxu2 %vm75_vm0, %v213_v0 }
 0x1fc   :  { %986 = vmatpush.msra.mxu3 %v1815_v11 }
 0x1fd   :  { %1786 = vmatmul.msk.f32.gmra.mxu1 %vm75_vm0, %v2163_v46  ;;  %1789 = vmatmul.msk.f32.vlgmr.msra.gmra.mxu2 %vm75_vm0, %v2165_v47  ;;  %v289_v12 = vpop.permute.xlu1 %288  ;;  %v920_v21 = vpop.permute.xlu0 %919 }
 0x1fe   :  { %1806 = vmatmul.msk.f32.gmra.mxu3 %vm75_vm0, %v168_v56  ;;  %1795 = vmatpush.xpose.msk.msrb.mxu1 %vm75_vm0, %v289_v12 }
 0x202   :  { %1796 = vmatpush.xpose.msk.msrb.mxu1 %vm75_vm0, %v287_v1 }
 0x205   :  { %1790 = vmatmul.msk.f32.gmra.mxu2 %vm75_vm0, %v2167_v48  ;;  %1797 = vmatmul.msk.f32.vlgmr.msrb.gmra.mxu1 %vm75_vm0, %v2171_v51  ;;  %v915_v17 = vpop.permute.xlu1 %914  ;;  %v930_v23 = vpop.permute.xlu0 %929 }
 0x206   :  { %1819 = vmatmul.msk.f32.vlgmr.msra.gmra.mxu3 %vm75_vm0, %v2074_v7 }
 0x20d   :  { %1798 = vmatmul.msk.f32.gmra.mxu1 %vm75_vm0, %v2174_v52  ;;  %v925_v22 = vpop.permute.xlu1 %924  ;;  %v2267_v26 = vpop.permute.xlu0 %939 }
 0x20e   :  { %1820 = vmatmul.msk.f32.gmra.mxu3 %vm75_vm0, %v2093_v10 }
 0x215   :  { %v935_v24 = vpop.permute.xlu1 %934  ;;  %v324_v27 = vpop.permute.xlu0 %323 }
 0x216   :  { %1821 = vmatmul.msk.f32.gmra.mxu3 %vm75_vm0, %v2112_v13 }
 0x21d   :  { %v2263_v25 = vpop.permute.xlu1 %944  ;;  %v398_v13 = vpop.permute.xlu0 %397 }
 0x21e   :  { %1822 = vmatmul.msk.f32.gmra.mxu3 %vm75_vm0, %v2119_v14 }
 0x225   :  { %v326_v7 = vpop.permute.xlu1 %325 }
 0x226   :  { %1823 = vmatmul.msk.f32.gmra.mxu3 %vm75_vm0, %v2132_v16  ;;  %1799 = vmatpush.xpose.msk.msrb.mxu2 %vm75_vm0, %v326_v7  ;;  %v435_v16 = vpop.permute.xlu2 %434 }
 0x22a   :  { %1800 = vmatpush.xpose.msk.msrb.mxu2 %vm75_vm0, %v324_v27 }
 0x22d   :  { %1801 = vmatmul.msk.f32.vlgmr.msrb.gmra.mxu2 %vm75_vm0, %v2178_v53  ;;  %v400_v10 = vpop.permute.xlu1 %399 }
 0x22e   :  { %1824 = vmatmul.msk.f32.gmra.mxu3 %vm75_vm0, %v2145_v18  ;;  %1807 = vmatpush.xpose.msk.msra.mxu1 %vm75_vm0, %v400_v10 }
 0x232   :  { %1808 = vmatpush.xpose.msk.msra.mxu1 %vm75_vm0, %v398_v13 }
 0x235   :  { %1802 = vmatmul.msk.f32.gmra.mxu2 %vm75_vm0, %v2182_v54  ;;  %v437_v14 = vpop.permute.xlu1 %436  ;;  %1809 = vmatmul.msk.f32.vlgmr.msra.gmra.mxu1 %vm75_vm0, %v2202_v57 }
 0x236   :  { %1825 = vmatmul.msk.f32.gmra.mxu3 %vm75_vm0, %v2152_v19  ;;  %1811 = vmatpush.xpose.msk.msra.mxu2 %vm75_vm0, %v437_v14 }
 0x23a   :  { %1812 = vmatpush.xpose.msk.msra.mxu2 %vm75_vm0, %v435_v16 }
 0x23d   :  { %1813 = vmatmul.msk.f32.vlgmr.msra.gmra.mxu2 %vm75_vm0, %v2212_v60  ;;  %1810 = vmatmul.msk.f32.gmra.mxu1 %vm75_vm0, %v2208_v58 }
 0x23e   :  { %1826 = vmatmul.msk.f32.gmra.mxu3 %vm75_vm0, %v2159_v20 }
 0x245   :  { %1814 = vmatmul.msk.f32.gmra.mxu2 %vm75_vm0, %v2219_v62 }
 0x248   :  { %v2295_v18 = vpop.f32.mrf.mxu3 }
 0x250   :  { %v2297_v19 = vpop.f32.mrf.mxu3 }
 0x272   :  { %v2299_v28 = vpop.f32.mrf.mxu1 }
 0x278   :  { %v2301_v29 = vpop.f32.mrf.mxu3 }
 0x27a   :  { %v207_v20 = vpop.f32.mrf.mxu1 }
 0x27b   :  { %v470_v30 = vmul.f32 0.35355338, %v207_v20 }
 0x27d   :  { %v489_v31 = vsel %vm485_vm1, %v470_v30, -inf }
 0x27e   :  { %490 = vmax.xlane.f32.xlu2 %v489_v31 }
 0x280   :  { %v2310_v43 = vpop.f32.mrf.mxu2 }
 0x281   :  { %v392_v32 = vpop.f32.mrf.mxu3 }
 0x282   :  { %v2304_v33 = vpop.f32.mrf.mxu1  ;;  %v2323_v58 = vmul.f32 0.35355338, %v392_v32 }
 0x284   :  { %v519_v62 = vsel %vm485_vm1, %v2323_v58, -inf }
 0x288   :  { %v2312_v46 = vpop.f32.mrf.mxu2 }
 0x289   :  { %v988_v34 = vpop.f32.mrf.mxu3 }
 0x28a   :  { %v989_v35 = vadd.f32 %v988_v34, %v910_v15  ;;  %v318_v36 = vpop.f32.mrf.mxu1 }
 0x28b   :  { %v2306_v37 = vmul.f32 0.35355338, %v318_v36 }
 0x28c   :  { %1012 = vxpose.xlu0.b32.start [1/8] (short) %v989_v35, 128 }
 0x28d   :  { %v507_v38 = vsel %vm485_vm1, %v2306_v37, -inf }
 0x28e   :  { %508 = vmax.xlane.f32.xlu2 %v507_v38 }
 0x291   :  { %v991_v39 = vpop.f32.mrf.mxu3 }
 0x292   :  { %v992_v40 = vadd.f32 %v991_v39, %v915_v17 }
 0x294   :  { %1013 = vxpose.xlu0.b32.cont [2/8] (short) %v992_v40, 128 }
 0x299   :  { %v994_v41 = vpop.f32.mrf.mxu3 }
 0x29a   :  { %v995_v42 = vadd.f32 %v994_v41, %v920_v21 }
 0x29c   :  { %1014 = vxpose.xlu0.b32.cont [3/8] (short) %v995_v42, 128 }
 0x2a1   :  { %v997_v44 = vpop.f32.mrf.mxu3 }
 0x2a2   :  { %v998_v45 = vadd.f32 %v997_v44, %v925_v22 }
 0x2a4   :  { %1015 = vxpose.xlu0.b32.cont [4/8] (short) %v998_v45, 128 }
 0x2a9   :  { %v1000_v47 = vpop.f32.mrf.mxu3 }
 0x2aa   :  { %v1001_v48 = vadd.f32 %v1000_v47, %v930_v23 }
 0x2ac   :  { %1016 = vxpose.xlu0.b32.cont [5/8] (short) %v1001_v48, 128 }
 0x2b0   :  { %v2314_v49 = vpop.f32.mrf.mxu2 }
 0x2b1   :  { %v1003_v50 = vpop.f32.mrf.mxu3 }
 0x2b2   :  { %v1004_v51 = vadd.f32 %v1003_v50, %v935_v24  ;;  %v2316_v53 = vpop.f32.mrf.mxu1 }
 0x2b4   :  { %1017 = vxpose.xlu0.b32.cont [6/8] (short) %v1004_v51, 128 }
 0x2b8   :  { %v355_v52 = vpop.f32.mrf.mxu2 }
 0x2b9   :  { %v2318_v54 = vmul.f32 0.35355338, %v355_v52  ;;  %v1006_v55 = vpop.f32.mrf.mxu3 }
 0x2ba   :  { %v1007_v56 = vadd.f32 %v1006_v55, %v2267_v26  ;;  %v429_v61 = vpop.f32.mrf.mxu1 }
 0x2bb   :  { %v513_v57 = vsel %vm485_vm1, %v2318_v54, -inf  ;;  %v2328_v63 = vmul.f32 0.35355338, %v429_v61 }
 0x2bc   :  { %1018 = vxpose.xlu0.b32.cont [7/8] (short) %v1007_v56, 128  ;;  %514 = vmax.xlane.f32.xlu2 %v513_v57 }
 0x2bd   :  { %v525_v1 = vsel %vm485_vm1, %v2328_v63, -inf }
 0x2c0   :  { %v2330_v0 = vpop.f32.mrf.mxu2 }
 0x2c1   :  { %v1009_v59 = vpop.f32.mrf.mxu3 }
 0x2c2   :  { %v1010_v60 = vadd.f32 %v1009_v59, %v2263_v25 }
 0x2c4   :  { %1019 = vxpose.xlu0.b32.end [8/8] (short) %v1010_v60, 128  ;;  %520 = vmax.xlane.f32.xlu2 %v519_v62  ;;  %v469_v60 = vmul.f32 0.35355338, %v2299_v28 }
 0x2c6   :  { %v486_v61 = vsel %vm485_vm1, %v469_v60, -inf }
 0x2c8   :  { %v466_v2 = vpop.f32.mrf.mxu2 }
 0x2c9   :  { %v2334_v3 = vmul.f32 0.35355338, %v466_v2 }
 0x2cb   :  { %v531_v4 = vsel %vm485_vm1, %v2334_v3, -inf }
 0x2cc   :  { %526 = vmax.xlane.f32.xlu2 %v525_v1 }
 0x2d4   :  { %532 = vmax.xlane.f32.xlu2 %v531_v4 }
 0x2f1   :  { %v491_v5 = vpop.xlane.xlu2 %490 }
 0x2f2   :  { %v535_v6 = vsub.f32 %v470_v30, %v491_v5 }
 0x2f4   :  { %v552_v8 = vmul.f32 1.442695, %v535_v6 }
 0x2f6   :  { %1868 = vpow2.f32 %v552_v8  ;;  %v471_v8 = vmul.f32 0.35355338, %v2310_v43  ;;  %v473_v43 = vmul.f32 0.35355338, %v2295_v18 }
 0x2fc   :  { %v1869_v9 = vpop.eup %1868 }
 0x2fd   :  { %v585_v11 = vsel %vm485_vm1, %v1869_v9, 0.0 }
 0x2fe   :  { %586 = vadd.xlane.f32.xlu2 %v585_v11  ;;  %v492_v11 = vsel %vm485_vm1, %v471_v8, -inf }
 0x301   :  { %v2342_v21 = vpop.xlane.xlu2 %508 }
 0x32f   :  { %v2345_v23 = vpop.xlane.xlu2 %514 }
 0x330   :  { %v1028_v12 = vpop.trf.xlu0 }
 0x331   :  { %1046 = vrot.lane.b32.xlu1 %v1028_v12, %s2023_s1 }
 0x337   :  { %v2348_v25 = vpop.xlane.xlu2 %520 }
 0x338   :  { %v1029_v15 = vpop.trf.xlu0 }
 0x339   :  { %1048 = vrot.lane.b32.xlu1 %v1029_v15, %s2023_s1 }
 0x33f   :  { %v2351_v7 = vpop.xlane.xlu2 %526 }
 0x340   :  { %v1030_v17 = vpop.trf.xlu0 }
 0x341   :  { %1083 = vrot.lane.b32.xlu1 %v1030_v17, %s2023_s1 }
 0x347   :  { %v2354_v10 = vpop.xlane.xlu2 %532 }
 0x348   :  { %v1031_v22 = vpop.trf.xlu0 }
 0x349   :  { %1085 = vrot.lane.b32.xlu1 %v1031_v22, %s2023_s1 }
 0x350   :  { %v1032_v24 = vpop.trf.xlu0 }
 0x351   :  { %1120 = vrot.lane.b32.xlu1 %v1032_v24, %s2023_s1 }
 0x358   :  { %v1033_v26 = vpop.trf.xlu0 }
 0x359   :  { %1122 = vrot.lane.b32.xlu1 %v1033_v26, %s2023_s1 }
 0x360   :  { %v1034_v27 = vpop.trf.xlu0 }
 0x361   :  { %1157 = vrot.lane.b32.xlu1 %v1034_v27, %s2023_s1 }
 0x368   :  { %v1035_v13 = vpop.trf.xlu0 }
 0x369   :  { %1159 = vrot.lane.b32.xlu1 %v1035_v13, %s2023_s1 }
 0x370   :  { %v2357_v14 = vpop.trf.xlu0 }
 0x371   :  { %1194 = vrot.lane.b32.xlu1 %v2357_v14, %s2023_s1  ;;  %v587_v16 = vpop.xlane.xlu2 %586 }
 0x372   :  { %1870 = vrcp.f32 %v587_v16  ;;  %v656_v34 = vand.u32 2147483648, %v587_v16  ;;  %v654_v36 = vand.u32 2147483647, %v587_v16  ;;  %vm650_vm3 = vweird.f32 %v587_v16 }
 0x374   :  { %v657_v39 = vor.u32 1.1754944e-38, %v656_v34  ;;  %vm655_vm5 = vcmp.eq.f32.partialorder %v654_v36, 8.507059e+37 }
 0x378   :  { %v1871_v20 = vpop.eup %1870  ;;  %v1037_v30 = vpop.trf.xlu0 }
 0x379   :  { %v646_v31 = vmul.f32 %v1871_v20, %v587_v16  ;;  %1196 = vrot.lane.b32.xlu1 %v1037_v30, %s2023_s1  ;;  %vm651_vm2 = vweird.f32 %v1871_v20 }
 0x37a   :  { %vm652_vm4 = vmor %vm650_vm3, %vm651_vm2 }
 0x37b   :  { %v647_v32 = vsub.f32 1.0, %v646_v31  ;;  %v2432_v31 = vmul.f32 0.35355338, %v2330_v0 }
 0x37d   :  { %v648_v35 = vmul.f32 %v1871_v20, %v647_v32 }
 0x37f   :  { %v649_v38 = vadd.f32 %v1871_v20, %v648_v35 }
 0x380   :  { %v1038_v40 = vpop.trf.xlu0 }
 0x381   :  { %v653_v41 = vsel %vm652_vm4, %v1871_v20, %v649_v38 }
 0x382   :  { %v658_v42 = vsel %vm655_vm5, %v657_v39, %v653_v41 }
 0x383   :  { %v659_v44 = vmul.f32 %v1869_v9, %v658_v42 }
 0x385   :  { %871 = vst.msk [vmem:[#allocation2 + $0x8] sm:$0xff] %vm485_vm1, %v659_v44 }
 0x388   :  { %v1039_v45 = vpop.trf.xlu0 }
 0x389   :  { %1233 = vrot.lane.b32.xlu1 %v1039_v45, %s2023_s1 }
 0x390   :  { %v1040_v47 = vpop.trf.xlu0 }
 0x398   :  { %v1041_v48 = vpop.trf.xlu0 }
 0x399   :  { %1270 = vrot.lane.b32.xlu1 %v1041_v48, %s2023_s1 }
 0x3a0   :  { %v2373_v56 = vpop.trf.xlu0 }
 0x3a1   :  { %1231 = vrot.lane.b32.xlu1 %v1038_v40, %s2023_s1  ;;  %1305 = vrot.lane.b32.xlu0 %v2373_v56, %s2023_s1 }
 0x3a3   :  { %v1047_v50 = vpop.permute.xlu1 %1046 }
 0x3a8   :  { %v1043_v4 = vpop.trf.xlu0 }
 0x3a9   :  { %1268 = vrot.lane.b32.xlu1 %v1040_v47, %s2023_s1 }
 0x3ab   :  { %v1049_v51 = vpop.permute.xlu1 %1048 }
 0x3ac   :  { %1827 = vmatpush.xpose.msk.msrb.mxu1 %vm75_vm0, %v1049_v51 }
 0x3b0   :  { %1828 = vmatpush.xpose.msk.msrb.mxu1 %vm75_vm0, %v1047_v50  ;;  %v541_v50 = vsub.f32 %v2306_v37, %v2342_v21 }
 0x3b3   :  { %1829 = vmatmul.msk.f32.vlgmr.msrb.gmra.mxu1 %vm75_vm0, %v1028_v12  ;;  %v1084_v52 = vpop.permute.xlu1 %1083  ;;  %v472_v12 = vmul.f32 0.35355338, %v2312_v46 }
 0x3bb   :  { %1830 = vmatmul.msk.f32.gmra.mxu1 %vm75_vm0, %v1029_v15  ;;  %v1086_v55 = vpop.permute.xlu1 %1085 }
 0x3bc   :  { %1831 = vmatpush.xpose.msk.msrb.mxu2 %vm75_vm0, %v1086_v55  ;;  %v564_v55 = vmul.f32 1.442695, %v541_v50 }
 0x3c0   :  { %1832 = vmatpush.xpose.msk.msrb.mxu2 %vm75_vm0, %v1084_v52 }
 0x3c3   :  { %v1121_v57 = vpop.permute.xlu1 %1120  ;;  %1833 = vmatmul.msk.f32.vlgmr.msrb.gmra.mxu2 %vm75_vm0, %v1030_v17  ;;  %v495_v17 = vsel %vm485_vm1, %v472_v12, -inf }
 0x3cb   :  { %v1123_v59 = vpop.permute.xlu1 %1122  ;;  %1834 = vmatmul.msk.f32.gmra.mxu2 %vm75_vm0, %v1031_v22  ;;  %v498_v22 = vsel %vm485_vm1, %v473_v43, -inf }
 0x3cc   :  { %1835 = vmatpush.xpose.msk.msrb.mxu0 %vm75_vm0, %v1123_v59 }
 0x3d0   :  { %1836 = vmatpush.xpose.msk.msrb.mxu0 %vm75_vm0, %v1121_v57 }
 0x3d3   :  { %487 = vmax.xlane.f32.xlu1 %v486_v61  ;;  %1837 = vmatmul.msk.f32.vlgmr.msrb.gmra.mxu0 %vm75_vm0, %v1032_v24  ;;  %v1158_v62 = vpop.permute.xlu1 %1157  ;;  %v474_v24 = vmul.f32 0.35355338, %v2297_v19 }
 0x3d5   :  { %v501_v46 = vsel %vm485_vm1, %v474_v24, -inf }
 0x3db   :  { %1838 = vmatmul.msk.f32.gmra.mxu0 %vm75_vm0, %v1033_v26  ;;  %v1160_v1 = vpop.permute.xlu1 %1159  ;;  %v2412_v26 = vmul.f32 0.35355338, %v2304_v33  ;;  %v2427_v33 = vmul.f32 0.35355338, %v2316_v53 }
 0x3dc   :  { %1839 = vmatpush.xpose.msk.msra.mxu1 %vm75_vm0, %v1160_v1 }
 0x3e0   :  { %1840 = vmatpush.xpose.msk.msra.mxu1 %vm75_vm0, %v1158_v62  ;;  %v543_v62 = vsub.f32 %v2318_v54, %v2345_v23 }
 0x3e2   :  { %v568_v21 = vmul.f32 1.442695, %v543_v62 }
 0x3e3   :  { %1841 = vmatmul.msk.f32.vlgmr.msra.gmra.mxu1 %vm75_vm0, %v1034_v27  ;;  %v1195_v2 = vpop.permute.xlu1 %1194  ;;  %v504_v27 = vsel %vm485_vm1, %v2412_v26, -inf }
 0x3eb   :  { %1842 = vmatmul.msk.f32.gmra.mxu1 %vm75_vm0, %v1035_v13  ;;  %v1197_v28 = vpop.permute.xlu1 %1196  ;;  %v2417_v13 = vmul.f32 0.35355338, %v2314_v49  ;;  %v522_v49 = vsel %vm485_vm1, %v2427_v33, -inf }
 0x3ec   :  { %1307 = vrot.lane.b32.xlu1 %v1043_v4, %s2023_s1  ;;  %1843 = vmatpush.xpose.msk.msra.mxu2 %vm75_vm0, %v1197_v28 }
 0x3ed   :  { %v510_v18 = vsel %vm485_vm1, %v2417_v13, -inf }
 0x3f0   :  { %1844 = vmatpush.xpose.msk.msra.mxu2 %vm75_vm0, %v1195_v2 }
 0x3f3   :  { %1845 = vmatmul.msk.f32.vlgmr.msra.gmra.mxu2 %vm75_vm0, %v2357_v14  ;;  %v2422_v14 = vmul.f32 0.35355338, %v2301_v29  ;;  %v528_v29 = vsel %vm485_vm1, %v2432_v31, -inf }
 0x3f5   :  { %v516_v19 = vsel %vm485_vm1, %v2422_v14, -inf }
 0x3fb   :  { %1846 = vmatmul.msk.f32.gmra.mxu2 %vm75_vm0, %v1037_v30  ;;  %v1234_v5 = vpop.permute.xlu1 %1233 }
 0x3fc   :  { %1847 = vmatpush.xpose.msk.msra.mxu0 %vm75_vm0, %v1234_v5 }
 0x40b   :  { %v1271_v6 = vpop.permute.xlu1 %1270 }
 0x40c   :  { %1851 = vmatpush.xpose.msk.msrb.mxu1 %vm75_vm0, %v1271_v6 }
 0x413   :  { %v1232_v9 = vpop.permute.xlu1 %1231  ;;  %v1306_v35 = vpop.permute.xlu0 %1305 }
 0x414   :  { %1848 = vmatpush.xpose.msk.msra.mxu0 %vm75_vm0, %v1232_v9 }
 0x416   :  { %493 = vmax.xlane.f32.xlu1 %v492_v11 }
 0x417   :  { %1849 = vmatmul.msk.f32.vlgmr.msra.gmra.mxu0 %vm75_vm0, %v1038_v40 }
 0x41b   :  { %v1269_v15 = vpop.permute.xlu1 %1268 }
 0x41c   :  { %1852 = vmatpush.xpose.msk.msrb.mxu1 %vm75_vm0, %v1269_v15 }
 0x41e   :  { %496 = vmax.xlane.f32.xlu1 %v495_v17 }
 0x41f   :  { %1850 = vmatmul.msk.f32.gmra.mxu0 %vm75_vm0, %v1039_v45  ;;  %1853 = vmatmul.msk.f32.vlgmr.msrb.gmra.mxu1 %vm75_vm0, %v1040_v47 }
 0x426   :  { %499 = vmax.xlane.f32.xlu1 %v498_v22 }
 0x427   :  { %1854 = vmatmul.msk.f32.gmra.mxu1 %vm75_vm0, %v1041_v48 }
 0x42e   :  { %502 = vmax.xlane.f32.xlu1 %v501_v46 }
 0x436   :  { %505 = vmax.xlane.f32.xlu1 %v504_v27 }
 0x43e   :  { %511 = vmax.xlane.f32.xlu1 %v510_v18 }
 0x446   :  { %517 = vmax.xlane.f32.xlu1 %v516_v19  ;;  %v488_v16 = vpop.xlane.xlu1 %487 }
 0x447   :  { %v534_v20 = vsub.f32 %v469_v60, %v488_v16 }
 0x449   :  { %v550_v30 = vmul.f32 1.442695, %v534_v20 }
 0x44b   :  { %1872 = vpow2.f32 %v550_v30  ;;  %v549_v30 = vsub.f32 %v2334_v3, %v2354_v10 }
 0x44e   :  { %523 = vmax.xlane.f32.xlu1 %v522_v49 }
 0x451   :  { %v2436_v32 = vpop.eup %1872 }
 0x452   :  { %v582_v53 = vsel %vm485_vm1, %v2436_v32, 0.0 }
 0x456   :  { %529 = vmax.xlane.f32.xlu1 %v528_v29 }
 0x45e   :  { %v1308_v34 = vpop.permute.xlu1 %1307  ;;  %583 = vadd.xlane.f32.xlu1 %v582_v53 }
 0x45f   :  { %1855 = vmatpush.xpose.msk.msrb.mxu2 %vm75_vm0, %v1308_v34 }
 0x463   :  { %1856 = vmatpush.xpose.msk.msrb.mxu2 %vm75_vm0, %v1306_v35  ;;  %v580_v35 = vmul.f32 1.442695, %v549_v30 }
 0x466   :  { %1857 = vmatmul.msk.f32.vlgmr.msrb.gmra.mxu2 %vm75_vm0, %v2373_v56  ;;  %v2455_v56 = vpop.f32.mrf.mxu1 }
 0x46e   :  { %1858 = vmatmul.msk.f32.gmra.mxu2 %vm75_vm0, %v1043_v4  ;;  %v1078_v4 = vpop.f32.mrf.mxu1 }
 0x46f   :  { %v2474_v11 = vmul.f32 0.35355338, %v1078_v4 }
 0x471   :  { %v1359_v46 = vsel %vm485_vm1, %v2474_v11, -inf }
 0x476   :  { %v2476_v15 = vpop.f32.mrf.mxu1 }
 0x47e   :  { %v1189_v20 = vpop.f32.mrf.mxu1 }
 0x489   :  { %v494_v0 = vpop.xlane.xlu1 %493 }
 0x48a   :  { %v536_v36 = vsub.f32 %v471_v8, %v494_v0  ;;  %v545_v8 = vsub.f32 %v2323_v58, %v2348_v25  ;;  %v1149_v25 = vpop.f32.mrf.mxu0  ;;  %v2506_v0 = vmul.f32 0.35355338, %v1189_v20 }
 0x48b   :  { %v2491_v18 = vmul.f32 0.35355338, %v1149_v25 }
 0x48c   :  { %v554_v38 = vmul.f32 1.442695, %v536_v36  ;;  %v572_v9 = vmul.f32 1.442695, %v545_v8 }
 0x48d   :  { %v1368_v29 = vsel %vm485_vm1, %v2491_v18, -inf }
 0x48e   :  { %1874 = vpow2.f32 %v554_v38 }
 0x491   :  { %v497_v39 = vpop.xlane.xlu1 %496 }
 0x492   :  { %v537_v40 = vsub.f32 %v472_v12, %v497_v39  ;;  %v1152_v34 = vpop.f32.mrf.mxu0 }
 0x493   :  { %v2549_v25 = vmul.f32 0.35355338, %v1152_v34 }
 0x494   :  { %v2445_v41 = vpop.eup %1874  ;;  %v556_v42 = vmul.f32 1.442695, %v537_v40 }
 0x495   :  { %v588_v44 = vsel %vm485_vm1, %v2445_v41, 0.0 }
 0x496   :  { %1876 = vpow2.f32 %v556_v42  ;;  %589 = vadd.xlane.f32.xlu1 %v588_v44  ;;  %v1377_v42 = vsel %vm485_vm1, %v2506_v0, -inf }
 0x499   :  { %v500_v45 = vpop.xlane.xlu1 %499 }
 0x49a   :  { %v538_v47 = vsub.f32 %v473_v43, %v500_v45  ;;  %v1260_v45 = vpop.f32.mrf.mxu0 }
 0x49c   :  { %v2449_v48 = vpop.eup %1876  ;;  %v558_v51 = vmul.f32 1.442695, %v538_v47  ;;  %v2513_v39 = vpop.f32.mrf.mxu1  ;;  %v2521_v47 = vmul.f32 0.35355338, %v1260_v45 }
 0x49d   :  { %v591_v52 = vsel %vm485_vm1, %v2449_v48, 0.0 }
 0x49e   :  { %1878 = vpow2.f32 %v558_v51  ;;  %592 = vadd.xlane.f32.xlu2 %v591_v52 }
 0x49f   :  { %1880 = vpow2.f32 %v564_v55  ;;  %v1112_v55 = vpop.f32.mrf.mxu2 }
 0x4a0   :  { %v2536_v4 = vmul.f32 0.35355338, %v1112_v55 }
 0x4a1   :  { %v503_v57 = vpop.xlane.xlu1 %502 }
 0x4a2   :  { %v539_v59 = vsub.f32 %v474_v24, %v503_v57  ;;  %v547_v24 = vsub.f32 %v2328_v63, %v2351_v7 }
 0x4a4   :  { %v2457_v60 = vpop.eup %1878  ;;  %v560_v61 = vmul.f32 1.442695, %v539_v59 }
 0x4a5   :  { %v594_v37 = vsel %vm485_vm1, %v2457_v60, 0.0  ;;  %v2463_v2 = vpop.eup %1880 }
 0x4a6   :  { %1882 = vpow2.f32 %v560_v61  ;;  %595 = vadd.xlane.f32.xlu1 %v594_v37  ;;  %v603_v23 = vsel %vm485_vm1, %v2463_v2, 0.0  ;;  %v1386_v61 = vsel %vm485_vm1, %v2521_v47, -inf  ;;  %v1300_v37 = vpop.f32.mrf.mxu1 }
 0x4a7   :  { %1884 = vpow2.f32 %v568_v21 }
 0x4a9   :  { %v506_v1 = vpop.xlane.xlu1 %505 }
 0x4aa   :  { %v540_v28 = vsub.f32 %v2412_v26, %v506_v1 }
 0x4ac   :  { %v2466_v5 = vpop.eup %1882  ;;  %v562_v6 = vmul.f32 1.442695, %v540_v28 }
 0x4ad   :  { %v597_v54 = vsel %vm485_vm1, %v2466_v5, 0.0  ;;  %v2479_v43 = vpop.eup %1884 }
 0x4ae   :  { %1886 = vpow2.f32 %v562_v6  ;;  %598 = vadd.xlane.f32.xlu0 %v597_v54  ;;  %604 = vadd.xlane.f32.xlu1 %v603_v23  ;;  %v609_v27 = vsel %vm485_vm1, %v2479_v43, 0.0  ;;  %v1115_v6 = vpop.f32.mrf.mxu2  ;;  %v1362_v23 = vsel %vm485_vm1, %v2536_v4, -inf }
 0x4af   :  { %1888 = vpow2.f32 %v572_v9  ;;  %v2555_v20 = vmul.f32 0.35355338, %v1115_v6 }
 0x4b1   :  { %v512_v12 = vpop.xlane.xlu1 %511  ;;  %v1365_v34 = vsel %vm485_vm1, %v2555_v20, -inf }
 0x4b2   :  { %v542_v17 = vsub.f32 %v2417_v13, %v512_v12  ;;  %v576_v13 = vmul.f32 1.442695, %v547_v24  ;;  %v2547_v12 = vmul.f32 0.35355338, %v2455_v56 }
 0x4b4   :  { %v2481_v58 = vpop.eup %1886  ;;  %v566_v22 = vmul.f32 1.442695, %v542_v17 }
 0x4b5   :  { %v600_v26 = vsel %vm485_vm1, %v2481_v58, 0.0  ;;  %v2494_v63 = vpop.eup %1888 }
 0x4b6   :  { %1890 = vpow2.f32 %v566_v22  ;;  %1360 = vmax.xlane.f32.xlu0 %v1359_v46  ;;  %601 = vadd.xlane.f32.xlu2 %v600_v26  ;;  %v1223_v46 = vpop.f32.mrf.mxu2 }
 0x4b7   :  { %610 = vadd.xlane.f32.xlu1 %v609_v27  ;;  %1892 = vpow2.f32 %v576_v13  ;;  %v1356_v13 = vsel %vm485_vm1, %v2547_v12, -inf  ;;  %v2557_v30 = vmul.f32 0.35355338, %v1223_v46 }
 0x4b9   :  { %v518_v19 = vpop.xlane.xlu1 %517 }
 0x4ba   :  { %v544_v16 = vsub.f32 %v2422_v14, %v518_v19  ;;  %v615_v14 = vsel %vm485_vm1, %v2494_v63, 0.0  ;;  %v1371_v19 = vsel %vm485_vm1, %v2549_v25, -inf }
 0x4bc   :  { %v2496_v7 = vpop.eup %1890  ;;  %v570_v49 = vmul.f32 1.442695, %v544_v16 }
 0x4bd   :  { %v606_v53 = vsel %vm485_vm1, %v2496_v7, 0.0  ;;  %v2509_v10 = vpop.eup %1892 }
 0x4be   :  { %1894 = vpow2.f32 %v570_v49  ;;  %1369 = vmax.xlane.f32.xlu0 %v1368_v29  ;;  %607 = vadd.xlane.f32.xlu2 %v606_v53 }
 0x4bf   :  { %616 = vadd.xlane.f32.xlu1 %v615_v14  ;;  %1896 = vpow2.f32 %v580_v35  ;;  %v1380_v14 = vsel %vm485_vm1, %v2557_v30, -inf  ;;  %v1226_v35 = vpop.f32.mrf.mxu2 }
 0x4c0   :  { %v2574_v45 = vmul.f32 0.35355338, %v1226_v35 }
 0x4c1   :  { %v524_v36 = vpop.xlane.xlu1 %523 }
 0x4c2   :  { %v546_v3 = vsub.f32 %v2427_v33, %v524_v36  ;;  %v621_v33 = vsel %vm485_vm1, %v2509_v10, 0.0  ;;  %v1263_v36 = vpop.f32.mrf.mxu0 }
 0x4c4   :  { %v2511_v38 = vpop.eup %1894  ;;  %v574_v40 = vmul.f32 1.442695, %v546_v3  ;;  %v2566_v3 = vmul.f32 0.35355338, %v2476_v15 }
 0x4c5   :  { %v612_v44 = vsel %vm485_vm1, %v2511_v38, 0.0  ;;  %v2524_v52 = vpop.eup %1896 }
 0x4c6   :  { %1898 = vpow2.f32 %v574_v40  ;;  %1378 = vmax.xlane.f32.xlu0 %v1377_v42  ;;  %613 = vadd.xlane.f32.xlu2 %v612_v44  ;;  %v627_v21 = vsel %vm485_vm1, %v2524_v52, 0.0  ;;  %v2568_v40 = vmul.f32 0.35355338, %v1263_v36 }
 0x4c7   :  { %622 = vadd.xlane.f32.xlu1 %v621_v33 }
 0x4c8   :  { %v1389_v42 = vsel %vm485_vm1, %v2568_v40, -inf }
 0x4c9   :  { %v530_v50 = vpop.xlane.xlu1 %529 }
 0x4ca   :  { %v548_v51 = vsub.f32 %v2432_v31, %v530_v50  ;;  %v2534_v31 = vmul.f32 0.35355338, %v1300_v37  ;;  %v1383_v50 = vsel %vm485_vm1, %v2574_v45, -inf }
 0x4cc   :  { %v2526_v57 = vpop.eup %1898  ;;  %v578_v59 = vmul.f32 1.442695, %v548_v51  ;;  %v1395_v8 = vsel %vm485_vm1, %v2534_v31, -inf  ;;  %v2583_v51 = vmul.f32 0.35355338, %v2513_v39 }
 0x4cd   :  { %v618_v62 = vsel %vm485_vm1, %v2526_v57, 0.0 }
 0x4ce   :  { %1900 = vpow2.f32 %v578_v59  ;;  %1387 = vmax.xlane.f32.xlu0 %v1386_v61  ;;  %619 = vadd.xlane.f32.xlu2 %v618_v62  ;;  %v1392_v55 = vsel %vm485_vm1, %v2583_v51, -inf }
 0x4cf   :  { %628 = vadd.xlane.f32.xlu1 %v627_v21 }
 0x4d1   :  { %v584_v1 = vpop.xlane.xlu1 %583 }
 0x4d2   :  { %1902 = vrcp.f32 %v584_v1  ;;  %v641_v24 = vand.u32 2147483648, %v584_v1  ;;  %v639_v27 = vand.u32 2147483647, %v584_v1  ;;  %vm635_vm7 = vweird.f32 %v584_v1 }
 0x4d4   :  { %v2538_v28 = vpop.eup %1900  ;;  %v642_v56 = vor.u32 1.1754944e-38, %v641_v24  ;;  %vm640_vm9 = vcmp.eq.f32.partialorder %v639_v27, 8.507059e+37 }
 0x4d5   :  { %v624_v54 = vsel %vm485_vm1, %v2538_v28, 0.0 }
 0x4d6   :  { %1396 = vmax.xlane.f32.xlu0 %v1395_v8  ;;  %625 = vadd.xlane.f32.xlu2 %v624_v54 }
 0x4d7   :  { %1363 = vmax.xlane.f32.xlu1 %v1362_v23 }
 0x4d8   :  { %v1903_v9 = vpop.eup %1902 }
 0x4d9   :  { %v631_v17 = vmul.f32 %v1903_v9, %v584_v1  ;;  %vm636_vm6 = vweird.f32 %v1903_v9 }
 0x4da   :  { %vm637_vm8 = vmor %vm635_vm7, %vm636_vm6 }
 0x4db   :  { %v632_v22 = vsub.f32 1.0, %v631_v17 }
 0x4dd   :  { %v633_v26 = vmul.f32 %v1903_v9, %v632_v22 }
 0x4de   :  { %1357 = vmax.xlane.f32.xlu2 %v1356_v13 }
 0x4df   :  { %v634_v16 = vadd.f32 %v1903_v9, %v633_v26  ;;  %1372 = vmax.xlane.f32.xlu1 %v1371_v19 }
 0x4e1   :  { %v638_v49 = vsel %vm637_vm8, %v1903_v9, %v634_v16 }
 0x4e2   :  { %v643_v29 = vsel %vm640_vm9, %v642_v56, %v638_v49 }
 0x4e3   :  { %v644_v53 = vmul.f32 %v2436_v32, %v643_v29  ;;  %v1374_v32 = vsel %vm485_vm1, %v2566_v3, -inf }
 0x4e5   :  { %870 = vst.msk [vmem:[#allocation2] sm:$0xff] %vm485_vm1, %v644_v53 }
 0x4e6   :  { %1366 = vmax.xlane.f32.xlu2 %v1365_v34 }
 0x4e7   :  { %1381 = vmax.xlane.f32.xlu1 %v1380_v14 }
 0x4e9   :  { %v1334_v44 = vpop.f32.mrf.mxu2 }
 0x4ea   :  { %v2576_v33 = vmul.f32 0.35355338, %v1334_v44 }
 0x4ec   :  { %v1398_v15 = vsel %vm485_vm1, %v2576_v33, -inf }
 0x4ee   :  { %1375 = vmax.xlane.f32.xlu2 %v1374_v32 }
 0x4ef   :  { %1390 = vmax.xlane.f32.xlu1 %v1389_v42 }
 0x4f1   :  { %v1337_v59 = vpop.f32.mrf.mxu2 }
 0x4f2   :  { %v2587_v61 = vmul.f32 0.35355338, %v1337_v59 }
 0x4f4   :  { %v1401_v62 = vsel %vm485_vm1, %v2587_v61, -inf }
 0x4f6   :  { %1384 = vmax.xlane.f32.xlu2 %v1383_v50 }
 0x4f7   :  { %1399 = vmax.xlane.f32.xlu1 %v1398_v15 }
 0x4fe   :  { %1393 = vmax.xlane.f32.xlu2 %v1392_v55 }
 0x506   :  { %1402 = vmax.xlane.f32.xlu2 %v1401_v62 }
 0x509   :  { %v590_v37 = vpop.xlane.xlu1 %589 }
 0x50a   :  { %1904 = vrcp.f32 %v590_v37  ;;  %v671_v39 = vand.u32 2147483648, %v590_v37  ;;  %v669_v23 = vand.u32 2147483647, %v590_v37  ;;  %vm665_vm11 = vweird.f32 %v590_v37 }
 0x50c   :  { %v672_v22 = vor.u32 1.1754944e-38, %v671_v39  ;;  %vm670_vm13 = vcmp.eq.f32.partialorder %v669_v23, 8.507059e+37 }
 0x510   :  { %v1905_v21 = vpop.eup %1904 }
 0x511   :  { %v661_v1 = vmul.f32 %v1905_v21, %v590_v37  ;;  %v593_v6 = vpop.xlane.xlu2 %592  ;;  %vm666_vm10 = vweird.f32 %v1905_v21 }
 0x512   :  { %1906 = vrcp.f32 %v593_v6  ;;  %vm667_vm12 = vmor %vm665_vm11, %vm666_vm10  ;;  %v686_v16 = vand.u32 2147483648, %v593_v6  ;;  %v684_v49 = vand.u32 2147483647, %v593_v6  ;;  %vm680_vm15 = vweird.f32 %v593_v6 }
 0x513   :  { %v662_v8 = vsub.f32 1.0, %v661_v1 }
 0x514   :  { %v687_v34 = vor.u32 1.1754944e-38, %v686_v16  ;;  %vm685_vm2 = vcmp.eq.f32.partialorder %v684_v49, 8.507059e+37 }
 0x515   :  { %v663_v54 = vmul.f32 %v1905_v21, %v662_v8 }
 0x517   :  { %v664_v9 = vadd.f32 %v1905_v21, %v663_v54 }
 0x518   :  { %v1907_v17 = vpop.eup %1906 }
 0x519   :  { %v668_v24 = vsel %vm667_vm12, %v1905_v21, %v664_v9  ;;  %v676_v46 = vmul.f32 %v1907_v17, %v593_v6  ;;  %v596_v26 = vpop.xlane.xlu1 %595  ;;  %vm681_vm14 = vweird.f32 %v1907_v17 }
 0x51a   :  { %v673_v27 = vsel %vm670_vm13, %v672_v22, %v668_v24  ;;  %1908 = vrcp.f32 %v596_v26  ;;  %vm682_vm0 = vmor %vm680_vm15, %vm681_vm14  ;;  %v701_v50 = vand.u32 2147483648, %v596_v26  ;;  %v699_v55 = vand.u32 2147483647, %v596_v26 }
 0x51b   :  { %v674_v13 = vmul.f32 %v2445_v41, %v673_v27  ;;  %v677_v19 = vsub.f32 1.0, %v676_v46  ;;  %vm695_vm4 = vweird.f32 %v596_v26 }
 0x51c   :  { %v702_v37 = vor.u32 1.1754944e-38, %v701_v50  ;;  %vm700_vm6 = vcmp.eq.f32.partialorder %v699_v55, 8.507059e+37 }
 0x51d   :  { %872 = vst.msk [vmem:[#allocation2 + $0x10] sm:$0xff] %vm485_vm1, %v674_v13  ;;  %v678_v56 = vmul.f32 %v1907_v17, %v677_v19 }
 0x51f   :  { %v679_v29 = vadd.f32 %v1907_v17, %v678_v56 }
 0x520   :  { %v1909_v53 = vpop.eup %1908 }
 0x521   :  { %v683_v14 = vsel %vm682_vm0, %v1907_v17, %v679_v29  ;;  %v691_v35 = vmul.f32 %v1909_v53, %v596_v26  ;;  %v599_v36 = vpop.xlane.xlu0 %598  ;;  %v605_v32 = vpop.xlane.xlu1 %604  ;;  %vm696_vm3 = vweird.f32 %v1909_v53 }
 0x522   :  { %v688_v42 = vsel %vm685_vm2, %v687_v34, %v683_v14  ;;  %1910 = vrcp.f32 %v599_v36  ;;  %vm697_vm5 = vmor %vm695_vm4, %vm696_vm3  ;;  %v714_v24 = vand.u32 2147483647, %v599_v36  ;;  %v716_v46 = vand.u32 2147483648, %v599_v36 }
 0x523   :  { %v689_v41 = vmul.f32 %v2449_v48, %v688_v42  ;;  %v692_v44 = vsub.f32 1.0, %v691_v35  ;;  %1912 = vrcp.f32 %v605_v32  ;;  %v744_v27 = vand.u32 2147483647, %v605_v32 }
 0x524   :  { %v746_v16 = vand.u32 2147483648, %v605_v32  ;;  %vm710_vm9 = vweird.f32 %v599_v36  ;;  %vm740_vm11 = vweird.f32 %v605_v32  ;;  %vm715_vm12 = vcmp.eq.f32.partialorder %v714_v24, 8.507059e+37 }
 0x525   :  { %873 = vst.msk [vmem:[#allocation2 + $0x18] sm:$0xff] %vm485_vm1, %v689_v41  ;;  %v693_v15 = vmul.f32 %v1909_v53, %v692_v44  ;;  %vm745_vm14 = vcmp.eq.f32.partialorder %v744_v27, 8.507059e+37 }
 0x526   :  { %v747_v34 = vor.u32 1.1754944e-38, %v746_v16 }
 0x527   :  { %v694_v59 = vadd.f32 %v1909_v53, %v693_v15 }
 0x528   :  { %v1911_v62 = vpop.eup %1910 }
 0x529   :  { %v1913_v21 = vpop.eup %1912  ;;  %v698_v1 = vsel %vm697_vm5, %v1909_v53, %v694_v59  ;;  %v706_v6 = vmul.f32 %v1911_v62, %v599_v36  ;;  %v1361_v8 = vpop.xlane.xlu0 %1360  ;;  %vm711_vm7 = vweird.f32 %v1911_v62 }
 0x52a   :  { %v2595_v39 = vpop.xlane.xlu2 %601  ;;  %v703_v48 = vsel %vm700_vm6, %v702_v37, %v698_v1  ;;  %v736_v54 = vmul.f32 %v1913_v21, %v605_v32  ;;  %v1405_v23 = vsub.f32 %v2474_v11, %v1361_v8  ;;  %v2598_v9 = vpop.xlane.xlu1 %610  ;;  %vm741_vm8 = vweird.f32 %v1913_v21  ;;  %vm712_vm10 = vmor %vm710_vm9, %vm711_vm7 }
 0x52b   :  { %v704_v17 = vmul.f32 %v2457_v60, %v703_v48  ;;  %v707_v22 = vsub.f32 1.0, %v706_v6  ;;  %1914 = vrcp.f32 %v2598_v9  ;;  %v717_v60 = vor.u32 1.1754944e-38, %v716_v46  ;;  %vm742_vm13 = vmor %vm740_vm11, %vm741_vm8 }
 0x52c   :  { %v737_v26 = vsub.f32 1.0, %v736_v54  ;;  %v1422_v13 = vmul.f32 1.442695, %v1405_v23  ;;  %1916 = vrcp.f32 %v2595_v39  ;;  %v774_v36 = vand.u32 2147483647, %v2598_v9 }
 0x52d   :  { %874 = vst.msk [vmem:[#allocation2 + $0x20] sm:$0xff] %vm485_vm1, %v704_v17  ;;  %v708_v19 = vmul.f32 %v1911_v62, %v707_v22  ;;  %v776_v1 = vand.u32 2147483648, %v2598_v9  ;;  %v729_v8 = vand.u32 2147483647, %v2595_v39  ;;  %vm770_vm0 = vweird.f32 %v2598_v9 }
 0x52e   :  { %v738_v11 = vmul.f32 %v1913_v21, %v737_v26  ;;  %1918 = vpow2.f32 %v1422_v13  ;;  %vm775_vm4 = vcmp.eq.f32.partialorder %v774_v36, 8.507059e+37  ;;  %vm725_vm5 = vweird.f32 %v2595_v39 }
 0x52f   :  { %v709_v56 = vadd.f32 %v1911_v62, %v708_v19  ;;  %v777_v24 = vor.u32 1.1754944e-38, %v776_v1  ;;  %vm2627_vm6 = vcmp.eq.f32.partialorder %v729_v8, 8.507059e+37 }
 0x530   :  { %v739_v49 = vadd.f32 %v1913_v21, %v738_v11 }
 0x531   :  { %v1915_v29 = vpop.eup %1914  ;;  %v713_v53 = vsel %vm712_vm10, %v1911_v62, %v709_v56  ;;  %v1370_v14 = vpop.xlane.xlu0 %1369 }
 0x532   :  { %v2604_v35 = vpop.xlane.xlu2 %607  ;;  %v718_v42 = vsel %vm715_vm12, %v717_v60, %v713_v53  ;;  %v743_v41 = vsel %vm742_vm13, %v1913_v21, %v739_v49  ;;  %v766_v44 = vmul.f32 %v1915_v29, %v2598_v9  ;;  %v2608_v50 = vpop.xlane.xlu1 %616  ;;  %v1408_v59 = vsub.f32 %v2491_v18, %v1370_v14 }
 0x533   :  { %v1917_v15 = vpop.eup %1916  ;;  %v719_v32 = vmul.f32 %v2466_v5, %v718_v42  ;;  %v748_v55 = vsel %vm745_vm14, %v747_v34, %v743_v41  ;;  %1920 = vrcp.f32 %v2608_v50  ;;  %v731_v5 = vand.u32 2147483648, %v2595_v39 }
 0x534   :  { %v749_v62 = vmul.f32 %v2463_v2, %v748_v55  ;;  %v767_v37 = vsub.f32 1.0, %v766_v44  ;;  %v721_v21 = vmul.f32 %v1917_v15, %v2595_v39  ;;  %v2616_v6 = vpop.eup %1918  ;;  %v1428_v48 = vmul.f32 1.442695, %v1408_v59 }
 0x535   :  { %875 = vst.msk [vmem:[#allocation2 + $0x28] sm:$0xff] %vm485_vm1, %v719_v32  ;;  %vm771_vm15 = vweird.f32 %v1915_v29  ;;  %1922 = vrcp.f32 %v2604_v35  ;;  %vm726_vm2 = vweird.f32 %v1917_v15  ;;  %v1455_v17 = vsel %vm485_vm1, %v2616_v6, 0.0 }
 0x536   :  { %877 = vst.msk [vmem:[#allocation2 + $0x38] sm:$0xff] %vm485_vm1, %v749_v62  ;;  %v768_v18 = vmul.f32 %v1915_v29, %v767_v37  ;;  %v722_v54 = vsub.f32 1.0, %v721_v21  ;;  %1924 = vpow2.f32 %v1428_v48  ;;  %vm772_vm3 = vmor %vm770_vm0, %vm771_vm15  ;;  %1456 = vadd.xlane.f32.xlu1 %v1455_v17  ;;  %v732_v19 = vor.u32 1.1754944e-38, %v731_v5 }
 0x537   :  { %vm727_vm7 = vmor %vm725_vm5, %vm726_vm2  ;;  %v804_v39 = vand.u32 2147483647, %v2608_v50  ;;  %v806_v14 = vand.u32 2147483648, %v2608_v50  ;;  %v761_v44 = vand.u32 2147483648, %v2604_v35  ;;  %vm800_vm8 = vweird.f32 %v2608_v50 }
 0x538   :  { %v769_v2 = vadd.f32 %v1915_v29, %v768_v18  ;;  %v723_v23 = vmul.f32 %v1917_v15, %v722_v54  ;;  %vm755_vm11 = vweird.f32 %v2604_v35  ;;  %v759_v37 = vand.u32 2147483647, %v2604_v35 }
 0x539   :  { %v1921_v22 = vpop.eup %1920  ;;  %v1379_v26 = vpop.xlane.xlu0 %1378  ;;  %vm2651_vm10 = vcmp.eq.f32.partialorder %v804_v39, 8.507059e+37  ;;  %v807_v62 = vor.u32 1.1754944e-38, %v806_v14  ;;  %v762_v1 = vor.u32 1.1754944e-38, %v761_v44 }
 0x53a   :  { %v2631_v9 = vpop.xlane.xlu2 %613  ;;  %v773_v27 = vsel %vm772_vm3, %v1915_v29, %v769_v2  ;;  %v724_v13 = vadd.f32 %v1917_v15, %v723_v23  ;;  %v796_v16 = vmul.f32 %v1921_v22, %v2608_v50  ;;  %v2634_v11 = vpop.xlane.xlu1 %622  ;;  %v1411_v60 = vsub.f32 %v2506_v0, %v1379_v26 }
 0x53b   :  { %v778_v56 = vsel %vm775_vm4, %v777_v24, %v773_v27  ;;  %1926 = vrcp.f32 %v2634_v11  ;;  %v1923_v49 = vpop.eup %1922  ;;  %vm801_vm9 = vweird.f32 %v1921_v22  ;;  %v834_v54 = vand.u32 2147483647, %v2634_v11 }
 0x53c   :  { %v779_v53 = vmul.f32 %v2479_v43, %v778_v56  ;;  %v728_v34 = vsel %vm727_vm7, %v1917_v15, %v724_v13  ;;  %v797_v29 = vsub.f32 1.0, %v796_v16  ;;  %v751_v41 = vmul.f32 %v1923_v49, %v2604_v35  ;;  %v2646_v32 = vpop.eup %1924  ;;  %vm802_vm12 = vmor %vm800_vm8, %vm801_vm9 }
 0x53d   :  { %v733_v42 = vsel %vm2627_vm6, %v732_v19, %v728_v34  ;;  %v1434_v36 = vmul.f32 1.442695, %v1411_v60  ;;  %vm756_vm13 = vweird.f32 %v1923_v49  ;;  %v1464_v21 = vsel %vm485_vm1, %v2646_v32, 0.0 }
 0x53e   :  { %879 = vst.msk [vmem:[#allocation2 + $0x48] sm:$0xff] %vm485_vm1, %v779_v53  ;;  %v734_v0 = vmul.f32 %v2481_v58, %v733_v42  ;;  %v798_v55 = vmul.f32 %v1921_v22, %v797_v29  ;;  %v752_v15 = vsub.f32 1.0, %v751_v41  ;;  %1465 = vadd.xlane.f32.xlu1 %v1464_v21  ;;  %v836_v46 = vand.u32 2147483648, %v2634_v11  ;;  %vm757_vm14 = vmor %vm755_vm11, %vm756_vm13 }
 0x53f   :  { %1928 = vpow2.f32 %v1434_v36  ;;  %v789_v27 = vand.u32 2147483647, %v2631_v9  ;;  %vm760_vm15 = vcmp.eq.f32.partialorder %v759_v37, 8.507059e+37  ;;  %v791_v16 = vand.u32 2147483648, %v2631_v9 }
 0x540   :  { %876 = vst.msk [vmem:[#allocation2 + $0x30] sm:$0xff] %vm485_vm1, %v734_v0  ;;  %v799_v59 = vadd.f32 %v1921_v22, %v798_v55  ;;  %1930 = vrcp.f32 %v2631_v9  ;;  %v753_v50 = vmul.f32 %v1923_v49, %v752_v15  ;;  %vm830_vm0 = vweird.f32 %v2634_v11 }
 0x541   :  { %v1927_v58 = vpop.eup %1926  ;;  %v1388_v8 = vpop.xlane.xlu0 %1387  ;;  %vm2684_vm3 = vcmp.eq.f32.partialorder %v834_v54, 8.507059e+37  ;;  %vm785_vm4 = vweird.f32 %v2631_v9  ;;  %v837_v34 = vor.u32 1.1754944e-38, %v836_v46  ;;  %vm2690_vm5 = vcmp.eq.f32.partialorder %v789_v27, 8.507059e+37 }
 0x542   :  { %v2661_v5 = vpop.xlane.xlu2 %619  ;;  %v803_v48 = vsel %vm802_vm12, %v1921_v22, %v799_v59  ;;  %v826_v18 = vmul.f32 %v1927_v58, %v2634_v11  ;;  %v1414_v2 = vsub.f32 %v2521_v47, %v1388_v8  ;;  %v2666_v23 = vpop.xlane.xlu1 %628  ;;  %v754_v24 = vadd.f32 %v1923_v49, %v753_v50 }
 0x543   :  { %v808_v17 = vsel %vm2651_vm10, %v807_v62, %v803_v48  ;;  %1932 = vrcp.f32 %v2666_v23  ;;  %vm831_vm2 = vweird.f32 %v1927_v58  ;;  %v792_v11 = vor.u32 1.1754944e-38, %v791_v16 }
 0x544   :  { %v809_v26 = vmul.f32 %v2494_v63, %v808_v17  ;;  %v827_v22 = vsub.f32 1.0, %v826_v18  ;;  %v1440_v47 = vmul.f32 1.442695, %v1414_v2  ;;  %v758_v19 = vsel %vm757_vm14, %v1923_v49, %v754_v24  ;;  %vm832_vm6 = vmor %vm830_vm0, %vm831_vm2 }
 0x545   :  { %v2677_v13 = vpop.eup %1928  ;;  %1934 = vrcp.f32 %v2661_v5  ;;  %v763_v63 = vsel %vm760_vm15, %v762_v1, %v758_v19  ;;  %vm860_vm7 = vweird.f32 %v2666_v23  ;;  %v864_v55 = vand.u32 2147483647, %v2666_v23 }
 0x546   :  { %v1931_v56 = vpop.eup %1930  ;;  %881 = vst.msk [vmem:[#allocation2 + $0x58] sm:$0xff] %vm485_vm1, %v809_v26  ;;  %v828_v39 = vmul.f32 %v1927_v58, %v827_v22  ;;  %v764_v35 = vmul.f32 %v2496_v7, %v763_v63  ;;  %1936 = vpow2.f32 %v1440_v47  ;;  %v1473_v42 = vsel %vm485_vm1, %v2677_v13, 0.0 }
 0x547   :  { %v781_v49 = vmul.f32 %v1931_v56, %v2631_v9  ;;  %v866_v43 = vand.u32 2147483648, %v2666_v23  ;;  %1474 = vadd.xlane.f32.xlu1 %v1473_v42  ;;  %vm786_vm8 = vweird.f32 %v1931_v56  ;;  %vm815_vm9 = vweird.f32 %v2661_v5 }
 0x548   :  { %v829_v53 = vadd.f32 %v1927_v58, %v828_v39  ;;  %878 = vst.msk [vmem:[#allocation2 + $0x40] sm:$0xff] %vm485_vm1, %v764_v35  ;;  %vm787_vm10 = vmor %vm785_vm4, %vm786_vm8  ;;  %v819_v2 = vand.u32 2147483647, %v2661_v5  ;;  %v821_v24 = vand.u32 2147483648, %v2661_v5  ;;  %vm865_vm14 = vcmp.eq.f32.partialorder %v864_v55, 8.507059e+37 }
 0x549   :  { %v1933_v14 = vpop.eup %1932  ;;  %v782_v7 = vsub.f32 1.0, %v781_v49  ;;  %v1397_v41 = vpop.xlane.xlu0 %1396  ;;  %v867_v9 = vor.u32 1.1754944e-38, %v866_v43 }
 0x54a   :  { %v2698_v44 = vpop.xlane.xlu2 %625  ;;  %v833_v36 = vsel %vm832_vm6, %v1927_v58, %v829_v53  ;;  %v856_v0 = vmul.f32 %v1933_v14, %v2666_v23  ;;  %v1364_v15 = vpop.xlane.xlu1 %1363  ;;  %v1417_v50 = vsub.f32 %v2534_v31, %v1397_v41  ;;  %vm861_vm11 = vweird.f32 %v1933_v14 }
 0x54b   :  { %v1935_v59 = vpop.eup %1934  ;;  %v838_v62 = vsel %vm2684_vm3, %v837_v34, %v833_v36  ;;  %v783_v37 = vmul.f32 %v1931_v56, %v782_v7  ;;  %v1406_v18 = vsub.f32 %v2536_v4, %v1364_v15  ;;  %1938 = vrcp.f32 %v2698_v44  ;;  %vm862_vm13 = vmor %vm860_vm7, %vm861_vm11 }
 0x54c   :  { %v839_v1 = vmul.f32 %v2509_v10, %v838_v62  ;;  %v857_v21 = vsub.f32 1.0, %v856_v0  ;;  %v811_v58 = vmul.f32 %v1935_v59, %v2661_v5  ;;  %v1446_v48 = vmul.f32 1.442695, %v1417_v50  ;;  %v2711_v54 = vpop.eup %1936 }
 0x54d   :  { %v784_v8 = vadd.f32 %v1931_v56, %v783_v37  ;;  %v1424_v46 = vmul.f32 1.442695, %v1406_v18  ;;  %vm816_vm12 = vweird.f32 %v1935_v59  ;;  %v1482_v47 = vsel %vm485_vm1, %v2711_v54, 0.0 }
 0x54e   :  { %883 = vst.msk [vmem:[#allocation2 + $0x68] sm:$0xff] %vm485_vm1, %v839_v1  ;;  %v858_v31 = vmul.f32 %v1933_v14, %v857_v21  ;;  %v812_v10 = vsub.f32 1.0, %v811_v58  ;;  %1940 = vpow2.f32 %v1446_v48  ;;  %vm817_vm15 = vmor %vm815_vm9, %vm816_vm12  ;;  %v822_v23 = vor.u32 1.1754944e-38, %v821_v24 }
 0x54f   :  { %v788_v17 = vsel %vm787_vm10, %v1931_v56, %v784_v8  ;;  %1942 = vpow2.f32 %v1424_v46  ;;  %1483 = vadd.xlane.f32.xlu1 %v1482_v47  ;;  %vm820_vm0 = vcmp.eq.f32.partialorder %v819_v2, 8.507059e+37  ;;  %vm845_vm3 = vweird.f32 %v2698_v44 }
 0x550   :  { %v793_v4 = vsel %vm2690_vm5, %v792_v11, %v788_v17  ;;  %v859_v26 = vadd.f32 %v1933_v14, %v858_v31  ;;  %v813_v22 = vmul.f32 %v1935_v59, %v812_v10 }
 0x551   :  { %v794_v27 = vmul.f32 %v2511_v38, %v793_v4  ;;  %v1939_v35 = vpop.eup %1938 }
 0x552   :  { %v1358_v19 = vpop.xlane.xlu2 %1357  ;;  %v863_v16 = vsel %vm862_vm13, %v1933_v14, %v859_v26  ;;  %v814_v56 = vadd.f32 %v1935_v59, %v813_v22  ;;  %v1373_v63 = vpop.xlane.xlu1 %1372  ;;  %v841_v34 = vmul.f32 %v1939_v35, %v2698_v44  ;;  %vm846_vm2 = vweird.f32 %v1939_v35 }
 0x553   :  { %v1404_v39 = vsub.f32 %v2547_v12, %v1358_v19  ;;  %880 = vst.msk [vmem:[#allocation2 + $0x50] sm:$0xff] %vm485_vm1, %v794_v27  ;;  %v868_v38 = vsel %vm865_vm14, %v867_v9, %v863_v16  ;;  %v1409_v60 = vsub.f32 %v2549_v25, %v1373_v63  ;;  %v849_v25 = vand.u32 2147483647, %v2698_v44  ;;  %vm847_vm4 = vmor %vm845_vm3, %vm846_vm2 }
 0x554   :  { %v869_v49 = vmul.f32 %v2524_v52, %v868_v38  ;;  %v818_v53 = vsel %vm817_vm15, %v1935_v59, %v814_v56  ;;  %v2733_v29 = vpop.eup %1940  ;;  %v842_v5 = vsub.f32 1.0, %v841_v34  ;;  %v851_v52 = vand.u32 2147483648, %v2698_v44 }
 0x555   :  { %v823_v12 = vsel %vm820_vm0, %v822_v23, %v818_v53  ;;  %v1430_v14 = vmul.f32 1.442695, %v1409_v60  ;;  %v1420_v7 = vmul.f32 1.442695, %v1404_v39  ;;  %v2737_v42 = vpop.eup %1942  ;;  %v1491_v41 = vsel %vm485_vm1, %v2733_v29, 0.0 }
 0x556   :  { %885 = vst.msk [vmem:[#allocation2 + $0x78] sm:$0xff] %vm485_vm1, %v869_v49  ;;  %v824_v11 = vmul.f32 %v2526_v57, %v823_v12  ;;  %v843_v36 = vmul.f32 %v1939_v35, %v842_v5  ;;  %v1458_v0 = vsel %vm485_vm1, %v2737_v42, 0.0  ;;  %v852_v59 = vor.u32 1.1754944e-38, %v851_v52 }
 0x557   :  { %1944 = vpow2.f32 %v1430_v14  ;;  %1459 = vadd.xlane.f32.xlu2 %v1458_v0  ;;  %1492 = vadd.xlane.f32.xlu1 %v1491_v41  ;;  %vm850_vm5 = vcmp.eq.f32.partialorder %v849_v25, 8.507059e+37 }
 0x558   :  { %882 = vst.msk [vmem:[#allocation2 + $0x60] sm:$0xff] %vm485_vm1, %v824_v11  ;;  %1946 = vpow2.f32 %v1420_v7  ;;  %v844_v55 = vadd.f32 %v1939_v35, %v843_v36 }
 0x55a   :  { %v1367_v57 = vpop.xlane.xlu2 %1366  ;;  %v1382_v43 = vpop.xlane.xlu1 %1381  ;;  %v848_v37 = vsel %vm847_vm4, %v1939_v35, %v844_v55 }
 0x55b   :  { %v1407_v15 = vsub.f32 %v2555_v20, %v1367_v57  ;;  %v1412_v62 = vsub.f32 %v2557_v30, %v1382_v43  ;;  %v853_v21 = vsel %vm850_vm5, %v852_v59, %v848_v37 }
 0x55c   :  { %v854_v48 = vmul.f32 %v2538_v28, %v853_v21 }
 0x55d   :  { %v1426_v50 = vmul.f32 1.442695, %v1407_v15  ;;  %v2749_v1 = vpop.eup %1944  ;;  %v1436_v58 = vmul.f32 1.442695, %v1412_v62 }
 0x55e   :  { %v2751_v8 = vpop.eup %1946  ;;  %v1467_v44 = vsel %vm485_vm1, %v2749_v1, 0.0  ;;  %884 = vst.msk [vmem:[#allocation2 + $0x70] sm:$0xff] %vm485_vm1, %v854_v48 }
 0x55f   :  { %1948 = vpow2.f32 %v1426_v50  ;;  %v1452_v20 = vsel %vm485_vm1, %v2751_v8, 0.0  ;;  %1468 = vadd.xlane.f32.xlu2 %v1467_v44 }
 0x560   :  { %1950 = vpow2.f32 %v1436_v58  ;;  %1453 = vadd.xlane.f32.xlu0 %v1452_v20 }
 0x562   :  { %v1376_v30 = vpop.xlane.xlu2 %1375  ;;  %v1391_v18 = vpop.xlane.xlu1 %1390 }
 0x563   :  { %v1410_v31 = vsub.f32 %v2566_v3, %v1376_v30  ;;  %v1415_v10 = vsub.f32 %v2568_v40, %v1391_v18 }
 0x565   :  { %v2761_v2 = vpop.eup %1948  ;;  %v1432_v28 = vmul.f32 1.442695, %v1410_v31  ;;  %v1442_v24 = vmul.f32 1.442695, %v1415_v10 }
 0x566   :  { %v2763_v17 = vpop.eup %1950  ;;  %v1461_v46 = vsel %vm485_vm1, %v2761_v2, 0.0 }
 0x567   :  { %1952 = vpow2.f32 %v1432_v28  ;;  %v1476_v4 = vsel %vm485_vm1, %v2763_v17, 0.0 }
 0x568   :  { %1954 = vpow2.f32 %v1442_v24  ;;  %1462 = vadd.xlane.f32.xlu0 %v1461_v46  ;;  %1477 = vadd.xlane.f32.xlu2 %v1476_v4 }
 0x56a   :  { %v1385_v26 = vpop.xlane.xlu2 %1384  ;;  %v1400_v3 = vpop.xlane.xlu1 %1399 }
 0x56b   :  { %v1413_v40 = vsub.f32 %v2574_v45, %v1385_v26  ;;  %v1418_v22 = vsub.f32 %v2576_v33, %v1400_v3 }
 0x56d   :  { %v2771_v27 = vpop.eup %1952  ;;  %v1438_v9 = vmul.f32 1.442695, %v1413_v40  ;;  %v1448_v19 = vmul.f32 1.442695, %v1418_v22 }
 0x56e   :  { %v2773_v47 = vpop.eup %1954  ;;  %v1470_v16 = vsel %vm485_vm1, %v2771_v27, 0.0 }
 0x56f   :  { %1956 = vpow2.f32 %v1438_v9  ;;  %v1485_v56 = vsel %vm485_vm1, %v2773_v47, 0.0 }
 0x570   :  { %1958 = vpow2.f32 %v1448_v19  ;;  %1471 = vadd.xlane.f32.xlu0 %v1470_v16  ;;  %1486 = vadd.xlane.f32.xlu2 %v1485_v56 }
 0x572   :  { %v1394_v63 = vpop.xlane.xlu2 %1393 }
 0x573   :  { %v1416_v45 = vsub.f32 %v2583_v51, %v1394_v63 }
 0x575   :  { %v2780_v33 = vpop.eup %1956  ;;  %v1444_v39 = vmul.f32 1.442695, %v1416_v45 }
 0x576   :  { %v2782_v35 = vpop.eup %1958  ;;  %v1479_v38 = vsel %vm485_vm1, %v2780_v33, 0.0 }
 0x577   :  { %1960 = vpow2.f32 %v1444_v39  ;;  %v1494_v23 = vsel %vm485_vm1, %v2782_v35, 0.0 }
 0x578   :  { %1480 = vadd.xlane.f32.xlu0 %v1479_v38  ;;  %1495 = vadd.xlane.f32.xlu2 %v1494_v23 }
 0x57a   :  { %v1403_v60 = vpop.xlane.xlu2 %1402 }
 0x57b   :  { %v1419_v49 = vsub.f32 %v2587_v61, %v1403_v60 }
 0x57d   :  { %v2789_v53 = vpop.eup %1960  ;;  %v1450_v51 = vmul.f32 1.442695, %v1419_v49 }
 0x57e   :  { %v1488_v34 = vsel %vm485_vm1, %v2789_v53, 0.0 }
 0x57f   :  { %1962 = vpow2.f32 %v1450_v51 }
 0x580   :  { %1489 = vadd.xlane.f32.xlu0 %v1488_v34 }
 0x585   :  { %v2793_v12 = vpop.eup %1962 }
 0x586   :  { %v1497_v14 = vsel %vm485_vm1, %v2793_v12, 0.0 }
 0x588   :  { %1498 = vadd.xlane.f32.xlu0 %v1497_v14 }
 0x5a9   :  { %v1457_v7 = vpop.xlane.xlu1 %1456 }
 0x5aa   :  { %1964 = vrcp.f32 %v1457_v7  ;;  %v1526_v52 = vand.u32 2147483648, %v1457_v7  ;;  %v1524_v36 = vand.u32 2147483647, %v1457_v7  ;;  %vm1520_vm7 = vweird.f32 %v1457_v7 }
 0x5ac   :  { %v1527_v57 = vor.u32 1.1754944e-38, %v1526_v52  ;;  %vm1525_vm9 = vcmp.eq.f32.partialorder %v1524_v36, 8.507059e+37 }
 0x5b0   :  { %v1965_v11 = vpop.eup %1964 }
 0x5b1   :  { %v1516_v5 = vmul.f32 %v1965_v11, %v1457_v7  ;;  %v1466_v25 = vpop.xlane.xlu1 %1465  ;;  %vm1521_vm6 = vweird.f32 %v1965_v11 }
 0x5b2   :  { %1966 = vrcp.f32 %v1466_v25  ;;  %vm1522_vm8 = vmor %vm1520_vm7, %vm1521_vm6  ;;  %v1571_v21 = vand.u32 2147483648, %v1466_v25  ;;  %v1569_v48 = vand.u32 2147483647, %v1466_v25  ;;  %vm1565_vm11 = vweird.f32 %v1466_v25 }
 0x5b3   :  { %v1517_v61 = vsub.f32 1.0, %v1516_v5 }
 0x5b4   :  { %v1572_v30 = vor.u32 1.1754944e-38, %v1571_v21  ;;  %vm1570_vm13 = vcmp.eq.f32.partialorder %v1569_v48, 8.507059e+37 }
 0x5b5   :  { %v1518_v41 = vmul.f32 %v1965_v11, %v1517_v61 }
 0x5b7   :  { %v1519_v0 = vadd.f32 %v1965_v11, %v1518_v41 }
 0x5b8   :  { %v1967_v55 = vpop.eup %1966 }
 0x5b9   :  { %v1523_v43 = vsel %vm1522_vm8, %v1965_v11, %v1519_v0  ;;  %v1561_v59 = vmul.f32 %v1967_v55, %v1466_v25  ;;  %vm1566_vm10 = vweird.f32 %v1967_v55 }
 0x5ba   :  { %v1528_v15 = vsel %vm1525_vm9, %v1527_v57, %v1523_v43  ;;  %v1475_v62 = vpop.xlane.xlu1 %1474  ;;  %vm1567_vm12 = vmor %vm1565_vm11, %vm1566_vm10 }
 0x5bb   :  { %v1529_v37 = vmul.f32 %v2616_v6, %v1528_v15  ;;  %1968 = vrcp.f32 %v1475_v62  ;;  %v1562_v50 = vsub.f32 1.0, %v1561_v59  ;;  %v1616_v46 = vand.u32 2147483648, %v1475_v62 }
 0x5bc   :  { %v1614_v26 = vand.u32 2147483647, %v1475_v62  ;;  %vm1610_vm15 = vweird.f32 %v1475_v62 }
 0x5bd   :  { %1742 = vst.msk [vmem:[#allocation2 + $0x88] sm:$0xff] %vm485_vm1, %v1529_v37  ;;  %v1563_v58 = vmul.f32 %v1967_v55, %v1562_v50  ;;  %v1617_v22 = vor.u32 1.1754944e-38, %v1616_v46 }
 0x5be   :  { %vm1615_vm2 = vcmp.eq.f32.partialorder %v1614_v26, 8.507059e+37 }
 0x5bf   :  { %v1564_v44 = vadd.f32 %v1967_v55, %v1563_v58 }
 0x5c1   :  { %v1969_v20 = vpop.eup %1968  ;;  %v1568_v18 = vsel %vm1567_vm12, %v1967_v55, %v1564_v44 }
 0x5c2   :  { %v1606_v31 = vmul.f32 %v1969_v20, %v1475_v62  ;;  %v1484_v10 = vpop.xlane.xlu1 %1483  ;;  %v1573_v28 = vsel %vm1570_vm13, %v1572_v30, %v1568_v18  ;;  %vm1611_vm14 = vweird.f32 %v1969_v20 }
 0x5c3   :  { %1970 = vrcp.f32 %v1484_v10  ;;  %v1574_v6 = vmul.f32 %v2646_v32, %v1573_v28  ;;  %vm1612_vm0 = vmor %vm1610_vm15, %vm1611_vm14  ;;  %v1661_v39 = vand.u32 2147483648, %v1484_v10  ;;  %v1659_v23 = vand.u32 2147483647, %v1484_v10 }
 0x5c4   :  { %v1607_v24 = vsub.f32 1.0, %v1606_v31  ;;  %vm1655_vm4 = vweird.f32 %v1484_v10 }
 0x5c5   :  { %1745 = vst.msk [vmem:[#allocation2 + $0xa0] sm:$0xff] %vm485_vm1, %v1574_v6  ;;  %v1662_v14 = vor.u32 1.1754944e-38, %v1661_v39  ;;  %vm1660_vm6 = vcmp.eq.f32.partialorder %v1659_v23, 8.507059e+37 }
 0x5c6   :  { %v1608_v4 = vmul.f32 %v1969_v20, %v1607_v24 }
 0x5c8   :  { %v1609_v3 = vadd.f32 %v1969_v20, %v1608_v4 }
 0x5c9   :  { %v1971_v40 = vpop.eup %1970 }
 0x5ca   :  { %v1460_v9 = vpop.xlane.xlu2 %1459  ;;  %v1613_v19 = vsel %vm1612_vm0, %v1969_v20, %v1609_v3  ;;  %v1651_v16 = vmul.f32 %v1971_v40, %v1484_v10  ;;  %v1493_v56 = vpop.xlane.xlu1 %1492  ;;  %vm1656_vm3 = vweird.f32 %v1971_v40 }
 0x5cb   :  { %1972 = vrcp.f32 %v1460_v9  ;;  %v1618_v63 = vsel %vm1615_vm2, %v1617_v22, %v1613_v19  ;;  %vm1657_vm5 = vmor %vm1655_vm4, %vm1656_vm3  ;;  %v1704_v36 = vand.u32 2147483647, %v1493_v56  ;;  %v1541_v0 = vand.u32 2147483648, %v1460_v9 }
 0x5cc   :  { %1974 = vrcp.f32 %v1493_v56  ;;  %v1619_v32 = vmul.f32 %v2677_v13, %v1618_v63  ;;  %v1652_v45 = vsub.f32 1.0, %v1651_v16  ;;  %v1706_v57 = vand.u32 2147483648, %v1493_v56 }
 0x5cd   :  { %v1539_v43 = vand.u32 2147483647, %v1460_v9  ;;  %vm1700_vm9 = vweird.f32 %v1493_v56  ;;  %vm1535_vm10 = vweird.f32 %v1460_v9  ;;  %vm2811_vm11 = vcmp.eq.f32.partialorder %v1704_v36, 8.507059e+37 }
 0x5ce   :  { %1748 = vst.msk [vmem:[#allocation2 + $0xb8] sm:$0xff] %vm485_vm1, %v1619_v32  ;;  %v1653_v38 = vmul.f32 %v1971_v40, %v1652_v45  ;;  %v1707_v44 = vor.u32 1.1754944e-38, %v1706_v57 }
 0x5cf   :  { %vm1540_vm14 = vcmp.eq.f32.partialorder %v1539_v43, 8.507059e+37 }
 0x5d0   :  { %v1654_v49 = vadd.f32 %v1971_v40, %v1653_v38 }
 0x5d1   :  { %v1973_v60 = vpop.eup %1972 }
 0x5d2   :  { %v1975_v34 = vpop.eup %1974  ;;  %v1531_v7 = vmul.f32 %v1973_v60, %v1460_v9  ;;  %v2806_v11 = vpop.xlane.xlu2 %1468  ;;  %v1658_v13 = vsel %vm1657_vm5, %v1971_v40, %v1654_v49  ;;  %vm1536_vm7 = vweird.f32 %v1973_v60 }
 0x5d3   :  { %v2803_v51 = vpop.xlane.xlu0 %1453  ;;  %v1696_v5 = vmul.f32 %v1975_v34, %v1493_v56  ;;  %v1663_v25 = vsel %vm1660_vm6, %v1662_v14, %v1658_v13  ;;  %vm1701_vm8 = vweird.f32 %v1975_v34  ;;  %vm1537_vm12 = vmor %vm1535_vm10, %vm1536_vm7  ;;  %v1586_v22 = vand.u32 2147483648, %v2806_v11 }
 0x5d4   :  { %1976 = vrcp.f32 %v2803_v51  ;;  %v1532_v61 = vsub.f32 1.0, %v1531_v7  ;;  %v1664_v52 = vmul.f32 %v2711_v54, %v1663_v25  ;;  %v1542_v54 = vor.u32 1.1754944e-38, %v1541_v0  ;;  %vm1702_vm13 = vmor %vm1700_vm9, %vm1701_vm8 }
 0x5d5   :  { %1978 = vrcp.f32 %v2806_v11  ;;  %v1697_v41 = vsub.f32 1.0, %v1696_v5  ;;  %v1509_v46 = vand.u32 2147483647, %v2803_v51  ;;  %v1511_v4 = vand.u32 2147483648, %v2803_v51 }
 0x5d6   :  { %v1533_v55 = vmul.f32 %v1973_v60, %v1532_v61  ;;  %1751 = vst.msk [vmem:[#allocation2 + $0xd0] sm:$0xff] %vm485_vm1, %v1664_v52  ;;  %vm1505_vm0 = vweird.f32 %v2803_v51  ;;  %v1584_v19 = vand.u32 2147483647, %v2806_v11  ;;  %vm1580_vm5 = vweird.f32 %v2806_v11 }
 0x5d7   :  { %v1698_v15 = vmul.f32 %v1975_v34, %v1697_v41  ;;  %vm1510_vm4 = vcmp.eq.f32.partialorder %v1509_v46, 8.507059e+37  ;;  %v1587_v38 = vor.u32 1.1754944e-38, %v1586_v22 }
 0x5d8   :  { %v1534_v62 = vadd.f32 %v1973_v60, %v1533_v55  ;;  %vm1585_vm7 = vcmp.eq.f32.partialorder %v1584_v19, 8.507059e+37 }
 0x5d9   :  { %v1699_v37 = vadd.f32 %v1975_v34, %v1698_v15 }
 0x5da   :  { %v1977_v59 = vpop.eup %1976  ;;  %v1538_v20 = vsel %vm1537_vm12, %v1973_v60, %v1534_v62 }
 0x5db   :  { %v1501_v21 = vmul.f32 %v1977_v59, %v2803_v51  ;;  %v2816_v58 = vpop.xlane.xlu0 %1462  ;;  %v1979_v48 = vpop.eup %1978  ;;  %v1703_v18 = vsel %vm1702_vm13, %v1975_v34, %v1699_v37  ;;  %v1543_v31 = vsel %vm1540_vm14, %v1542_v54, %v1538_v20  ;;  %vm1506_vm15 = vweird.f32 %v1977_v59 }
 0x5dc   :  { %1980 = vrcp.f32 %v2816_v58  ;;  %v2819_v30 = vpop.xlane.xlu2 %1477  ;;  %v1576_v28 = vmul.f32 %v1979_v48, %v2806_v11  ;;  %v1708_v6 = vsel %vm2811_vm11, %v1707_v44, %v1703_v18  ;;  %v1544_v24 = vmul.f32 %v2737_v42, %v1543_v31  ;;  %vm1507_vm3 = vmor %vm1505_vm0, %vm1506_vm15 }
 0x5dd   :  { %v1502_v10 = vsub.f32 1.0, %v1501_v21  ;;  %v1709_v26 = vmul.f32 %v2733_v29, %v1708_v6  ;;  %1982 = vrcp.f32 %v2819_v30  ;;  %vm1581_vm2 = vweird.f32 %v1979_v48 }
 0x5de   :  { %v1577_v40 = vsub.f32 1.0, %v1576_v28  ;;  %1743 = vst.msk [vmem:[#allocation2 + $0x90] sm:$0xff] %vm485_vm1, %v1544_v24  ;;  %v1512_v29 = vor.u32 1.1754944e-38, %v1511_v4  ;;  %vm1582_vm6 = vmor %vm1580_vm5, %vm1581_vm2  ;;  %v1554_v7 = vand.u32 2147483647, %v2816_v58  ;;  %v1556_v11 = vand.u32 2147483648, %v2816_v58 }
 0x5df   :  { %v1503_v3 = vmul.f32 %v1977_v59, %v1502_v10  ;;  %1754 = vst.msk [vmem:[#allocation2 + $0xe8] sm:$0xff] %vm485_vm1, %v1709_v26  ;;  %vm1550_vm9 = vweird.f32 %v2816_v58  ;;  %v1631_v0 = vand.u32 2147483648, %v2819_v30  ;;  %vm1625_vm13 = vweird.f32 %v2819_v30 }
 0x5e0   :  { %v1578_v9 = vmul.f32 %v1979_v48, %v1577_v40  ;;  %vm1555_vm11 = vcmp.eq.f32.partialorder %v1554_v7, 8.507059e+37  ;;  %v1557_v36 = vor.u32 1.1754944e-38, %v1556_v11 }
 0x5e1   :  { %v1504_v42 = vadd.f32 %v1977_v59, %v1503_v3 }
 0x5e2   :  { %v1981_v16 = vpop.eup %1980  ;;  %v1579_v63 = vadd.f32 %v1979_v48, %v1578_v9 }
 0x5e3   :  { %v1508_v56 = vsel %vm1507_vm3, %v1977_v59, %v1504_v42  ;;  %v1546_v32 = vmul.f32 %v1981_v16, %v2816_v58  ;;  %v2836_v45 = vpop.xlane.xlu0 %1471  ;;  %v1983_v34 = vpop.eup %1982  ;;  %vm1551_vm8 = vweird.f32 %v1981_v16 }
 0x5e4   :  { %v1513_v39 = vsel %vm1510_vm4, %v1512_v29, %v1508_v56  ;;  %1984 = vrcp.f32 %v2836_v45  ;;  %v2839_v23 = vpop.xlane.xlu2 %1486  ;;  %v1583_v49 = vsel %vm1582_vm6, %v1979_v48, %v1579_v63  ;;  %v1621_v25 = vmul.f32 %v1983_v34, %v2819_v30  ;;  %vm1552_vm10 = vmor %vm1550_vm9, %vm1551_vm8 }
 0x5e5   :  { %v1514_v60 = vmul.f32 %v2751_v8, %v1513_v39  ;;  %v1547_v51 = vsub.f32 1.0, %v1546_v32  ;;  %v1588_v14 = vsel %vm1585_vm7, %v1587_v38, %v1583_v49  ;;  %1986 = vrcp.f32 %v2839_v23 }
 0x5e6   :  { %v1589_v13 = vmul.f32 %v2749_v1, %v1588_v14  ;;  %v1629_v8 = vand.u32 2147483647, %v2819_v30  ;;  %v1622_v52 = vsub.f32 1.0, %v1621_v25  ;;  %vm1626_vm12 = vweird.f32 %v1983_v34 }
 0x5e7   :  { %1741 = vst.msk [vmem:[#allocation2 + $0x80] sm:$0xff] %vm485_vm1, %v1514_v60  ;;  %v1548_v5 = vmul.f32 %v1981_v16, %v1547_v51  ;;  %vm1627_vm15 = vmor %vm1625_vm13, %vm1626_vm12  ;;  %v1632_v48 = vor.u32 1.1754944e-38, %v1631_v0  ;;  %v1599_v44 = vand.u32 2147483647, %v2836_v45  ;;  %v1601_v20 = vand.u32 2147483648, %v2836_v45 }
 0x5e8   :  { %1746 = vst.msk [vmem:[#allocation2 + $0xa8] sm:$0xff] %vm485_vm1, %v1589_v13  ;;  %v1623_v1 = vmul.f32 %v1983_v34, %v1622_v52  ;;  %vm2856_vm14 = vcmp.eq.f32.partialorder %v1629_v8, 8.507059e+37  ;;  %vm1595_vm2 = vweird.f32 %v2836_v45  ;;  %v1674_v10 = vand.u32 2147483647, %v2839_v23 }
 0x5e9   :  { %v1549_v61 = vadd.f32 %v1981_v16, %v1548_v5  ;;  %v1676_v28 = vand.u32 2147483648, %v2839_v23  ;;  %vm1600_vm5 = vcmp.eq.f32.partialorder %v1599_v44, 8.507059e+37  ;;  %v1602_v26 = vor.u32 1.1754944e-38, %v1601_v20 }
 0x5ea   :  { %v1985_v41 = vpop.eup %1984  ;;  %v1624_v54 = vadd.f32 %v1983_v34, %v1623_v1  ;;  %vm1670_vm6 = vweird.f32 %v2839_v23  ;;  %vm1675_vm8 = vcmp.eq.f32.partialorder %v1674_v10, 8.507059e+37 }
 0x5eb   :  { %v1553_v57 = vsel %vm1552_vm10, %v1981_v16, %v1549_v61  ;;  %v1591_v55 = vmul.f32 %v1985_v41, %v2836_v45  ;;  %v2853_v43 = vpop.xlane.xlu0 %1480  ;;  %v1987_v15 = vpop.eup %1986  ;;  %vm1596_vm0 = vweird.f32 %v1985_v41 }
 0x5ec   :  { %v1558_v59 = vsel %vm1555_vm11, %v1557_v36, %v1553_v57  ;;  %1988 = vrcp.f32 %v2853_v43  ;;  %v2861_v37 = vpop.xlane.xlu2 %1495  ;;  %v1666_v58 = vmul.f32 %v1987_v15, %v2839_v23  ;;  %v1628_v30 = vsel %vm1627_vm15, %v1983_v34, %v1624_v54  ;;  %vm1597_vm4 = vmor %vm1595_vm2, %vm1596_vm0 }
 0x5ed   :  { %v1559_v50 = vmul.f32 %v2761_v2, %v1558_v59  ;;  %v1592_v21 = vsub.f32 1.0, %v1591_v55  ;;  %1990 = vrcp.f32 %v2861_v37  ;;  %v1633_v2 = vsel %vm2856_vm14, %v1632_v48, %v1628_v30 }
 0x5ee   :  { %v1667_v31 = vsub.f32 1.0, %v1666_v58  ;;  %v1634_v6 = vmul.f32 %v2763_v17, %v1633_v2  ;;  %vm1671_vm3 = vweird.f32 %v1987_v15  ;;  %v1677_v17 = vor.u32 1.1754944e-38, %v1676_v28 }
 0x5ef   :  { %1744 = vst.msk [vmem:[#allocation2 + $0x98] sm:$0xff] %vm485_vm1, %v1559_v50  ;;  %v1593_v18 = vmul.f32 %v1985_v41, %v1592_v21  ;;  %vm1672_vm7 = vmor %vm1670_vm6, %vm1671_vm3  ;;  %v1644_v45 = vand.u32 2147483647, %v2853_v43  ;;  %v1646_v39 = vand.u32 2147483648, %v2853_v43  ;;  %vm1640_vm10 = vweird.f32 %v2853_v43 }
 0x5f0   :  { %v1668_v46 = vmul.f32 %v1987_v15, %v1667_v31  ;;  %1749 = vst.msk [vmem:[#allocation2 + $0xc0] sm:$0xff] %vm485_vm1, %v1634_v6  ;;  %v1719_v34 = vand.u32 2147483647, %v2861_v37  ;;  %vm1715_vm14 = vweird.f32 %v2861_v37 }
 0x5f1   :  { %v1594_v24 = vadd.f32 %v1985_v41, %v1593_v18  ;;  %vm1645_vm13 = vcmp.eq.f32.partialorder %v1644_v45, 8.507059e+37  ;;  %v1647_v7 = vor.u32 1.1754944e-38, %v1646_v39 }
 0x5f2   :  { %v1989_v4 = vpop.eup %1988  ;;  %v1669_v40 = vadd.f32 %v1987_v15, %v1668_v46  ;;  %vm1720_vm0 = vcmp.eq.f32.partialorder %v1719_v34, 8.507059e+37 }
 0x5f3   :  { %v1598_v3 = vsel %vm1597_vm4, %v1985_v41, %v1594_v24  ;;  %v1636_v22 = vmul.f32 %v1989_v4, %v2853_v43  ;;  %v1490_v42 = vpop.xlane.xlu0 %1489  ;;  %v1991_v9 = vpop.eup %1990  ;;  %vm1641_vm9 = vweird.f32 %v1989_v4 }
 0x5f4   :  { %v1603_v19 = vsel %vm1600_vm5, %v1602_v26, %v1598_v3  ;;  %1992 = vrcp.f32 %v1490_v42  ;;  %v1673_v29 = vsel %vm1672_vm7, %v1987_v15, %v1669_v40  ;;  %v1711_v63 = vmul.f32 %v1991_v9, %v2861_v37  ;;  %vm1642_vm12 = vmor %vm1640_vm10, %vm1641_vm9 }
 0x5f5   :  { %v1604_v16 = vmul.f32 %v2771_v27, %v1603_v19  ;;  %v1637_v56 = vsub.f32 1.0, %v1636_v22  ;;  %v1678_v32 = vsel %vm1675_vm8, %v1677_v17, %v1673_v29  ;;  %v1721_v27 = vand.u32 2147483648, %v2861_v37 }
 0x5f6   :  { %v1679_v38 = vmul.f32 %v2773_v47, %v1678_v32  ;;  %v1712_v60 = vsub.f32 1.0, %v1711_v63  ;;  %vm1716_vm11 = vweird.f32 %v1991_v9  ;;  %v1691_v0 = vand.u32 2147483648, %v1490_v42 }
 0x5f7   :  { %1747 = vst.msk [vmem:[#allocation2 + $0xb0] sm:$0xff] %vm485_vm1, %v1604_v16  ;;  %v1638_v23 = vmul.f32 %v1989_v4, %v1637_v56  ;;  %vm1717_vm15 = vmor %vm1715_vm14, %vm1716_vm11  ;;  %v1722_v8 = vor.u32 1.1754944e-38, %v1721_v27  ;;  %v1689_v55 = vand.u32 2147483647, %v1490_v42  ;;  %vm1685_vm3 = vweird.f32 %v1490_v42 }
 0x5f8   :  { %1752 = vst.msk [vmem:[#allocation2 + $0xd8] sm:$0xff] %vm485_vm1, %v1679_v38  ;;  %v1713_v51 = vmul.f32 %v1991_v9, %v1712_v60  ;;  %v1692_v59 = vor.u32 1.1754944e-38, %v1691_v0 }
 0x5f9   :  { %v1639_v49 = vadd.f32 %v1989_v4, %v1638_v23  ;;  %vm1690_vm5 = vcmp.eq.f32.partialorder %v1689_v55, 8.507059e+37 }
 0x5fa   :  { %v1993_v14 = vpop.eup %1992  ;;  %v1714_v47 = vadd.f32 %v1991_v9, %v1713_v51 }
 0x5fb   :  { %v1643_v11 = vsel %vm1642_vm12, %v1989_v4, %v1639_v49  ;;  %v1681_v13 = vmul.f32 %v1993_v14, %v1490_v42  ;;  %v1499_v5 = vpop.xlane.xlu0 %1498  ;;  %vm1686_vm2 = vweird.f32 %v1993_v14 }
 0x5fc   :  { %v1648_v25 = vsel %vm1645_vm13, %v1647_v7, %v1643_v11  ;;  %1994 = vrcp.f32 %v1499_v5  ;;  %v1718_v52 = vsel %vm1717_vm15, %v1991_v9, %v1714_v47  ;;  %vm1687_vm4 = vmor %vm1685_vm3, %vm1686_vm2  ;;  %v1736_v21 = vand.u32 2147483648, %v1499_v5 }
 0x5fd   :  { %v1649_v61 = vmul.f32 %v2780_v33, %v1648_v25  ;;  %v1682_v41 = vsub.f32 1.0, %v1681_v13  ;;  %v1723_v36 = vsel %vm1720_vm0, %v1722_v8, %v1718_v52  ;;  %v1734_v58 = vand.u32 2147483647, %v1499_v5 }
 0x5fe   :  { %v1724_v57 = vmul.f32 %v2782_v35, %v1723_v36  ;;  %vm1730_vm7 = vweird.f32 %v1499_v5  ;;  %v1737_v44 = vor.u32 1.1754944e-38, %v1736_v21 }
 0x5ff   :  { %1750 = vst.msk [vmem:[#allocation2 + $0xc8] sm:$0xff] %vm485_vm1, %v1649_v61  ;;  %v1683_v1 = vmul.f32 %v1993_v14, %v1682_v41  ;;  %vm1735_vm9 = vcmp.eq.f32.partialorder %v1734_v58, 8.507059e+37 }
 0x600   :  { %1755 = vst.msk [vmem:[#allocation2 + $0xf0] sm:$0xff] %vm485_vm1, %v1724_v57 }
 0x601   :  { %v1684_v43 = vadd.f32 %v1993_v14, %v1683_v1 }
 0x602   :  { %v1995_v15 = vpop.eup %1994 }
 0x603   :  { %v1688_v33 = vsel %vm1687_vm4, %v1993_v14, %v1684_v43  ;;  %v1726_v62 = vmul.f32 %v1995_v15, %v1499_v5  ;;  %vm1731_vm6 = vweird.f32 %v1995_v15 }
 0x604   :  { %v1693_v37 = vsel %vm1690_vm5, %v1692_v59, %v1688_v33  ;;  %vm1732_vm8 = vmor %vm1730_vm7, %vm1731_vm6 }
 0x605   :  { %v1694_v50 = vmul.f32 %v2789_v53, %v1693_v37  ;;  %v1727_v54 = vsub.f32 1.0, %v1726_v62 }
 0x607   :  { %1753 = vst.msk [vmem:[#allocation2 + $0xe0] sm:$0xff] %vm485_vm1, %v1694_v50  ;;  %v1728_v35 = vmul.f32 %v1995_v15, %v1727_v54 }
 0x609   :  { %v1729_v48 = vadd.f32 %v1995_v15, %v1728_v35 }
 0x60b   :  { %v1733_v20 = vsel %vm1732_vm8, %v1995_v15, %v1729_v48 }
 0x60c   :  { %v1738_v53 = vsel %vm1735_vm9, %v1737_v44, %v1733_v20 }
 0x60d   :  { %v1739_v30 = vmul.f32 %v2793_v12, %v1738_v53 }
 0x60f   :  { %1756 = vst.msk [vmem:[#allocation2 + $0xf8] sm:$0xff] %vm485_vm1, %v1739_v30 }
 0x610   :  { %1769 = dma.vmem_to_hbm [thread:$0]  %s1762_s5, 4096, %s1764_s8, [#allocation3], %s2025_s9, %s2025_s9, %s2026_s10  }
 0x611   :  { %2020 = dma.done.wait [#allocation3], 4096  }
 0x612   :  { %2021 = vsyncadd [#allocation3], 4294963200 }
 0x613   :  { %1774 = vsyncpa [#allocation3], 1 }

</bundles_post_ra>
